<compile_context>
chip_gen: v7x
topology: tpu7x:2x2x1
jax: 0.10.0
libtpu: 0.0.40
codegen_flags: <defaults>
</compile_context>

<pallas_src>
import functools
import math

import jax
import jax.numpy as jnp
from jax import lax
from jax.experimental import pallas as pl
from jax.experimental.pallas import tpu as pltpu


def _mhsa_kernel(x_ref, wqkv_ref, bqkv_ref, gamma_ref, out_ref, *,
                 num_heads, head_dim, batch):
    """Whole batch in one grid step, C-major layout.

    Ref shapes:
      x_ref     : (B, C, N)  f32 tokens, channels on sublanes (also the residual)
      wqkv_ref  : (3C, C)    bf16 packed [Wq ; Wk ; Wv] (output channels on rows)
      bqkv_ref  : (3C, 1)    f32 packed [bq ; bk ; bv]
      gamma_ref : (1, 1)     f32 scalar in SMEM
      out_ref   : (B, C, N)  f32 C-major output
    """
    C = num_heads * head_dim
    d = head_dim
    scale = 1.0 / math.sqrt(float(d))
    gamma = gamma_ref[0, 0]

    w = wqkv_ref[...]              # (3C, C) bf16, loaded once
    bias = bqkv_ref[...]           # (3C, 1) f32, broadcast over lanes

    for b in range(batch):         # static unroll (batch is small)
        x_b = x_ref[b]             # (C, N) f32 — projection input + residual

        # Fused QKV projection on the MXU, C-major: (3C, C) @ (C, N) -> (3C, N).
        qkvT = jnp.dot(w, x_b.astype(jnp.bfloat16),
                       preferred_element_type=jnp.float32) + bias

        # Hoisted out of the head loop: scale Q once, transpose it once so the
        # per-head score matmul is the native (N, d) @ (d, N) MXU form.
        q_row = jnp.transpose(qkvT[:C] * scale)          # (N, C) f32
        kT = qkvT[C:2 * C]                               # (C, N) f32
        vT = qkvT[2 * C:]                                # (C, N) f32

        for h in range(num_heads):                       # static unroll
            r0, r1 = h * d, (h + 1) * d

            # s[n, m] = q_n . k_m  (scale already folded into q_row)
            s = jnp.dot(q_row[:, r0:r1], kT[r0:r1],
                        preferred_element_type=jnp.float32)          # (N, N) f32

            # softmax over keys (lane axis), all elementwise math in f32
            s_max = jnp.max(s, axis=-1, keepdims=True)
            e = jnp.exp(s - s_max)
            p = e * pl.reciprocal(jnp.sum(e, axis=-1, keepdims=True), approx=True)

            # o[c, n] = sum_m v[c, m] * p[n, m]  — RHS-transposed matmul, C-major out
            o_hT = lax.dot_general(vT[r0:r1], p,
                                   dimension_numbers=(((1,), (1,)), ((), ())),
                                   preferred_element_type=jnp.float32)  # (d, N)

            # gamma-scaled residual written straight into this head's sublane slice
            out_ref[b, r0:r1, :] = gamma * o_hT + x_b[r0:r1, :]


def multi_head_self_attention(x_nchw, wq, bq, wk, bk, wv, bv, gamma, num_heads):
    """Pallas implementation of MultiHeadSelfAttention.forward (eval mode).

    x_nchw : (B, C, W, H) float32
    wq/wk/wv : (C, C, 1, 1) PyTorch Conv2d 1x1 weights
    bq/bk/bv : (C,) biases
    gamma  : scalar
    """
    B, C, W, H = x_nchw.shape
    assert C % num_heads == 0
    d = C // num_heads
    N = W * H

    # ---- glue: pure reshapes, no transposes ----
    x_bcn = x_nchw.reshape(B, C, N)                                   # (B, C, N)

    def w2d(w):  # Conv2d 1x1 weight (C_out, C_in, 1, 1) -> (C_out, C_in)
        return w.reshape(C, C)

    wqkv = jnp.concatenate([w2d(wq), w2d(wk), w2d(wv)], axis=0)       # (3C, C)
    wqkv = wqkv.astype(jnp.bfloat16)                                  # halve weight DMA
    bqkv = jnp.concatenate([bq, bk, bv]).reshape(3 * C, 1).astype(jnp.float32)
    gamma2 = jnp.asarray(gamma, jnp.float32).reshape(1, 1)

    kernel = functools.partial(_mhsa_kernel, num_heads=num_heads,
                               head_dim=d, batch=B)

    out_bcn = pl.pallas_call(
        kernel,
        out_shape=jax.ShapeDtypeStruct((B, C, N), jnp.float32),
        grid_spec=pltpu.PrefetchScalarGridSpec(
            num_scalar_prefetch=0,
            grid=(1,),                                   # single fused step
            in_specs=[
                pl.BlockSpec((B, C, N), lambda i: (0, 0, 0)),        # x (C-major)
                pl.BlockSpec((3 * C, C), lambda i: (0, 0)),          # packed QKV weights
                pl.BlockSpec((3 * C, 1), lambda i: (0, 0)),          # packed biases
                pl.BlockSpec(memory_space=pltpu.MemorySpace.SMEM),   # gamma scalar
            ],
            out_specs=pl.BlockSpec((B, C, N), lambda i: (0, 0, 0)),
        ),
        compiler_params=pltpu.CompilerParams(
            dimension_semantics=("arbitrary",)),
    )(x_bcn, wqkv, bqkv, gamma2)

    # ---- glue: back to NCHW (pure reshape) ----
    out = out_bcn.reshape(B, C, W, H)
    # TODO(synk): nn.Dropout(p=0.5) applied as identity (eval mode); training-mode
    # stochastic dropout not implemented.
    return out


def _reference(x_nchw, wq, bq, wk, bk, wv, bv, gamma, num_heads):
    """Pure-JAX f32 reference mirroring the PyTorch forward (eval mode)."""
    B, C, W, H = x_nchw.shape
    d = C // num_heads
    N = W * H

    def conv1x1(x, w, b):
        y = jnp.einsum('oc,bcn->bon', w.reshape(C, C), x.reshape(B, C, N))
        return y + b[None, :, None]

    q = conv1x1(x_nchw, wq, bq).reshape(B, num_heads, d, N).transpose(0, 1, 3, 2)
    k = conv1x1(x_nchw, wk, bk).reshape(B, num_heads, d, N)
    v = conv1x1(x_nchw, wv, bv).reshape(B, num_heads, d, N)
    attn = jnp.einsum('bhnd,bhdm->bhnm', q, k)
    attn = jax.nn.softmax(attn / math.sqrt(d), axis=-1)
    out = jnp.einsum('bhnm,bhmd->bhnd', attn, v.transpose(0, 1, 3, 2))
    out = out.transpose(0, 1, 3, 2).reshape(B, C, W, H)
    return gamma * out + x_nchw


if __name__ == "__main__":
    B, C, W, H = 2, 32, 8, 8
    num_heads = 4

    key = jax.random.PRNGKey(0)
    kx, kwq, kbq, kwk, kbk, kwv, kbv = jax.random.split(key, 7)

    x = jax.random.normal(kx, (B, C, W, H), dtype=jnp.float32)

    # Conv2d(C, C, 1) parameter shapes; deterministic synthetic init.
    bound = 1.0 / math.sqrt(C)
    wq = jax.random.uniform(kwq, (C, C, 1, 1), jnp.float32, -bound, bound)
    bq = jax.random.uniform(kbq, (C,), jnp.float32, -bound, bound)
    wk = jax.random.uniform(kwk, (C, C, 1, 1), jnp.float32, -bound, bound)
    bk = jax.random.uniform(kbk, (C,), jnp.float32, -bound, bound)
    wv = jax.random.uniform(kwv, (C, C, 1, 1), jnp.float32, -bound, bound)
    bv = jax.random.uniform(kbv, (C,), jnp.float32, -bound, bound)
    # Module __init__ sets gamma = 0; use a nonzero value so the attention path
    # actually contributes to the output being checked.
    gamma = jnp.float32(0.5)

    run = jax.jit(functools.partial(multi_head_self_attention, num_heads=num_heads))
    out = run(x, wq, bq, wk, bk, wv, bv, gamma)
    out = jax.block_until_ready(out)

    ref = _reference(x, wq, bq, wk, bk, wv, bv, gamma, num_heads)
    assert out.shape == (B, C, W, H)
    # bf16 QKV-projection operands + approx reciprocal -> loosened tolerance
    assert jnp.allclose(out, ref, rtol=2e-2, atol=2e-2), \
        f"max abs err {jnp.max(jnp.abs(out - ref))}"

    print("KERNEL_OK")
</pallas_src>

<mosaic_0001>
module attributes {stable_mosaic.version = 11 : i64} {
  func.func @_mhsa_kernel(%arg0: i32, %arg1: memref<2x32x64xf32, #tpu.memory_space<vmem>>, %arg2: memref<96x32xbf16, #tpu.memory_space<vmem>>, %arg3: memref<96x1xf32, #tpu.memory_space<vmem>>, %arg4: memref<1x1xf32, #tpu.memory_space<smem>>, %arg5: memref<2x32x64xf32, #tpu.memory_space<vmem>>) attributes {dimension_semantics = [#tpu.dimension_semantics<arbitrary>], iteration_bounds = array<i64: 1>, scalar_prefetch = 0 : i64, scratch_operands = 0 : i64, tpu.core_type = #tpu.core_type<tc>, window_params = [{pipeline_mode = #tpu.pipeline_mode<synchronous>, transform_indices = @transform_0, window_bounds = array<i64: 2, 32, 64>}, {pipeline_mode = #tpu.pipeline_mode<synchronous>, transform_indices = @transform_1, window_bounds = array<i64: 96, 32>}, {pipeline_mode = #tpu.pipeline_mode<synchronous>, transform_indices = @transform_2, window_bounds = array<i64: 96, 1>}, {transform_indices = @transform_3, window_bounds = array<i64: 1, 1>}, {pipeline_mode = #tpu.pipeline_mode<synchronous>, transform_indices = @transform_4, window_bounds = array<i64: 2, 32, 64>}]} {
    %c0 = arith.constant 0 : index
    %c0_0 = arith.constant 0 : index
    %0 = memref.load %arg4[%c0, %c0_0] : memref<1x1xf32, #tpu.memory_space<smem>>
    %c0_1 = arith.constant 0 : index
    %c0_2 = arith.constant 0 : index
    %1 = vector.load %arg2[%c0_1, %c0_2] : memref<96x32xbf16, #tpu.memory_space<vmem>>, vector<96x32xbf16>
    %c0_3 = arith.constant 0 : index
    %c0_4 = arith.constant 0 : index
    %2 = vector.load %arg3[%c0_3, %c0_4] : memref<96x1xf32, #tpu.memory_space<vmem>>, vector<96x1xf32>
    %c0_5 = arith.constant 0 : index
    %c0_6 = arith.constant 0 : index
    %c0_7 = arith.constant 0 : index
    %3 = vector.load %arg1[%c0_5, %c0_6, %c0_7] : memref<2x32x64xf32, #tpu.memory_space<vmem>>, vector<1x32x64xf32>
    %4 = vector.shape_cast %3 : vector<1x32x64xf32> to vector<32x64xf32>
    %5 = arith.truncf %4 : vector<32x64xf32> to vector<32x64xbf16>
    %cst = arith.constant dense<0.000000e+00> : vector<96x64xf32>
    %6 = tpu.matmul %1, %5, %cst {dimension_numbers = #tpu.dot_dimension_numbers<[1], [0], [0], [1], [0, 0, 1, 1], [], []>} : vector<96x32xbf16>, vector<32x64xbf16>, vector<96x64xf32> -> vector<96x64xf32>
    %7 = vector.broadcast %2 : vector<96x1xf32> to vector<96x64xf32>
    %8 = arith.addf %6, %7 : vector<96x64xf32>
    %9 = vector.extract_strided_slice %8 {offsets = [0, 0], sizes = [32, 64], strides = [1, 1]} : vector<96x64xf32> to vector<32x64xf32>
    %cst_8 = arith.constant 0.353553385 : f32
    %10 = vector.broadcast %cst_8 : f32 to vector<32x64xf32>
    %11 = arith.mulf %9, %10 : vector<32x64xf32>
    %12 = tpu.transpose %11, [1, 0] : vector<32x64xf32> -> vector<64x32xf32>
    %13 = vector.extract_strided_slice %8 {offsets = [32, 0], sizes = [32, 64], strides = [1, 1]} : vector<96x64xf32> to vector<32x64xf32>
    %14 = vector.extract_strided_slice %8 {offsets = [64, 0], sizes = [32, 64], strides = [1, 1]} : vector<96x64xf32> to vector<32x64xf32>
    %15 = vector.extract_strided_slice %12 {offsets = [0, 0], sizes = [64, 8], strides = [1, 1]} : vector<64x32xf32> to vector<64x8xf32>
    %16 = vector.extract_strided_slice %13 {offsets = [0, 0], sizes = [8, 64], strides = [1, 1]} : vector<32x64xf32> to vector<8x64xf32>
    %cst_9 = arith.constant dense<0.000000e+00> : vector<64x64xf32>
    %17 = tpu.matmul %15, %16, %cst_9 {dimension_numbers = #tpu.dot_dimension_numbers<[1], [0], [0], [1], [0, 0, 1, 1], [], []>} : vector<64x8xf32>, vector<8x64xf32>, vector<64x64xf32> -> vector<64x64xf32>
    %cst_10 = arith.constant dense<0xFF800000> : vector<64xf32>
    %18 = vector.multi_reduction <maximumf>, %17, %cst_10 [1] : vector<64x64xf32> to vector<64xf32>
    %19 = vector.shape_cast %18 : vector<64xf32> to vector<64x1xf32>
    %20 = vector.broadcast %19 : vector<64x1xf32> to vector<64x64xf32>
    %21 = arith.subf %17, %20 : vector<64x64xf32>
    %22 = math.exp %21 : vector<64x64xf32>
    %cst_11 = arith.constant dense<0.000000e+00> : vector<64xf32>
    %23 = vector.multi_reduction <add>, %22, %cst_11 [1] : vector<64x64xf32> to vector<64xf32>
    %24 = vector.shape_cast %23 : vector<64xf32> to vector<64x1xf32>
    %25 = tpu.reciprocal %24 {approx = true} : vector<64x1xf32> -> vector<64x1xf32>
    %26 = vector.broadcast %25 : vector<64x1xf32> to vector<64x64xf32>
    %27 = arith.mulf %22, %26 : vector<64x64xf32>
    %28 = vector.extract_strided_slice %14 {offsets = [0, 0], sizes = [8, 64], strides = [1, 1]} : vector<32x64xf32> to vector<8x64xf32>
    %cst_12 = arith.constant dense<0.000000e+00> : vector<8x64xf32>
    %29 = tpu.matmul %28, %27, %cst_12 {dimension_numbers = #tpu.dot_dimension_numbers<[1], [1], [0], [0], [0, 0, 1, 0], [], []>} : vector<8x64xf32>, vector<64x64xf32>, vector<8x64xf32> -> vector<8x64xf32>
    %30 = vector.broadcast %0 : f32 to vector<8x64xf32>
    %31 = arith.mulf %30, %29 : vector<8x64xf32>
    %32 = vector.extract_strided_slice %4 {offsets = [0, 0], sizes = [8, 64], strides = [1, 1]} : vector<32x64xf32> to vector<8x64xf32>
    %33 = arith.addf %31, %32 : vector<8x64xf32>
    %c0_13 = arith.constant 0 : index
    %c0_14 = arith.constant 0 : index
    %c0_15 = arith.constant 0 : index
    %34 = vector.load %arg5[%c0_13, %c0_14, %c0_15] : memref<2x32x64xf32, #tpu.memory_space<vmem>>, vector<1x8x64xf32>
    %35 = vector.shape_cast %34 : vector<1x8x64xf32> to vector<8x64xf32>
    %36 = vector.shape_cast %33 : vector<8x64xf32> to vector<1x8x64xf32>
    tpu.vector_store %arg5[%c0_13, %c0_14, %c0_15], %36 {strides = array<i32>} : memref<2x32x64xf32, #tpu.memory_space<vmem>>, vector<1x8x64xf32>,
    %37 = vector.extract_strided_slice %12 {offsets = [0, 8], sizes = [64, 8], strides = [1, 1]} : vector<64x32xf32> to vector<64x8xf32>
    %38 = vector.extract_strided_slice %13 {offsets = [8, 0], sizes = [8, 64], strides = [1, 1]} : vector<32x64xf32> to vector<8x64xf32>
    %cst_16 = arith.constant dense<0.000000e+00> : vector<64x64xf32>
    %39 = tpu.matmul %37, %38, %cst_16 {dimension_numbers = #tpu.dot_dimension_numbers<[1], [0], [0], [1], [0, 0, 1, 1], [], []>} : vector<64x8xf32>, vector<8x64xf32>, vector<64x64xf32> -> vector<64x64xf32>
    %cst_17 = arith.constant dense<0xFF800000> : vector<64xf32>
    %40 = vector.multi_reduction <maximumf>, %39, %cst_17 [1] : vector<64x64xf32> to vector<64xf32>
    %41 = vector.shape_cast %40 : vector<64xf32> to vector<64x1xf32>
    %42 = vector.broadcast %41 : vector<64x1xf32> to vector<64x64xf32>
    %43 = arith.subf %39, %42 : vector<64x64xf32>
    %44 = math.exp %43 : vector<64x64xf32>
    %cst_18 = arith.constant dense<0.000000e+00> : vector<64xf32>
    %45 = vector.multi_reduction <add>, %44, %cst_18 [1] : vector<64x64xf32> to vector<64xf32>
    %46 = vector.shape_cast %45 : vector<64xf32> to vector<64x1xf32>
    %47 = tpu.reciprocal %46 {approx = true} : vector<64x1xf32> -> vector<64x1xf32>
    %48 = vector.broadcast %47 : vector<64x1xf32> to vector<64x64xf32>
    %49 = arith.mulf %44, %48 : vector<64x64xf32>
    %50 = vector.extract_strided_slice %14 {offsets = [8, 0], sizes = [8, 64], strides = [1, 1]} : vector<32x64xf32> to vector<8x64xf32>
    %cst_19 = arith.constant dense<0.000000e+00> : vector<8x64xf32>
    %51 = tpu.matmul %50, %49, %cst_19 {dimension_numbers = #tpu.dot_dimension_numbers<[1], [1], [0], [0], [0, 0, 1, 0], [], []>} : vector<8x64xf32>, vector<64x64xf32>, vector<8x64xf32> -> vector<8x64xf32>
    %52 = vector.broadcast %0 : f32 to vector<8x64xf32>
    %53 = arith.mulf %52, %51 : vector<8x64xf32>
    %54 = vector.extract_strided_slice %4 {offsets = [8, 0], sizes = [8, 64], strides = [1, 1]} : vector<32x64xf32> to vector<8x64xf32>
    %55 = arith.addf %53, %54 : vector<8x64xf32>
    %c0_20 = arith.constant 0 : index
    %c8 = arith.constant 8 : index
    %c0_21 = arith.constant 0 : index
    %56 = vector.load %arg5[%c0_20, %c8, %c0_21] : memref<2x32x64xf32, #tpu.memory_space<vmem>>, vector<1x8x64xf32>
    %57 = vector.shape_cast %56 : vector<1x8x64xf32> to vector<8x64xf32>
    %58 = vector.shape_cast %55 : vector<8x64xf32> to vector<1x8x64xf32>
    tpu.vector_store %arg5[%c0_20, %c8, %c0_21], %58 {strides = array<i32>} : memref<2x32x64xf32, #tpu.memory_space<vmem>>, vector<1x8x64xf32>,
    %59 = vector.extract_strided_slice %12 {offsets = [0, 16], sizes = [64, 8], strides = [1, 1]} : vector<64x32xf32> to vector<64x8xf32>
    %60 = vector.extract_strided_slice %13 {offsets = [16, 0], sizes = [8, 64], strides = [1, 1]} : vector<32x64xf32> to vector<8x64xf32>
    %cst_22 = arith.constant dense<0.000000e+00> : vector<64x64xf32>
    %61 = tpu.matmul %59, %60, %cst_22 {dimension_numbers = #tpu.dot_dimension_numbers<[1], [0], [0], [1], [0, 0, 1, 1], [], []>} : vector<64x8xf32>, vector<8x64xf32>, vector<64x64xf32> -> vector<64x64xf32>
    %cst_23 = arith.constant dense<0xFF800000> : vector<64xf32>
    %62 = vector.multi_reduction <maximumf>, %61, %cst_23 [1] : vector<64x64xf32> to vector<64xf32>
    %63 = vector.shape_cast %62 : vector<64xf32> to vector<64x1xf32>
    %64 = vector.broadcast %63 : vector<64x1xf32> to vector<64x64xf32>
    %65 = arith.subf %61, %64 : vector<64x64xf32>
    %66 = math.exp %65 : vector<64x64xf32>
    %cst_24 = arith.constant dense<0.000000e+00> : vector<64xf32>
    %67 = vector.multi_reduction <add>, %66, %cst_24 [1] : vector<64x64xf32> to vector<64xf32>
    %68 = vector.shape_cast %67 : vector<64xf32> to vector<64x1xf32>
    %69 = tpu.reciprocal %68 {approx = true} : vector<64x1xf32> -> vector<64x1xf32>
    %70 = vector.broadcast %69 : vector<64x1xf32> to vector<64x64xf32>
    %71 = arith.mulf %66, %70 : vector<64x64xf32>
    %72 = vector.extract_strided_slice %14 {offsets = [16, 0], sizes = [8, 64], strides = [1, 1]} : vector<32x64xf32> to vector<8x64xf32>
    %cst_25 = arith.constant dense<0.000000e+00> : vector<8x64xf32>
    %73 = tpu.matmul %72, %71, %cst_25 {dimension_numbers = #tpu.dot_dimension_numbers<[1], [1], [0], [0], [0, 0, 1, 0], [], []>} : vector<8x64xf32>, vector<64x64xf32>, vector<8x64xf32> -> vector<8x64xf32>
    %74 = vector.broadcast %0 : f32 to vector<8x64xf32>
    %75 = arith.mulf %74, %73 : vector<8x64xf32>
    %76 = vector.extract_strided_slice %4 {offsets = [16, 0], sizes = [8, 64], strides = [1, 1]} : vector<32x64xf32> to vector<8x64xf32>
    %77 = arith.addf %75, %76 : vector<8x64xf32>
    %c0_26 = arith.constant 0 : index
    %c16 = arith.constant 16 : index
    %c0_27 = arith.constant 0 : index
    %78 = vector.load %arg5[%c0_26, %c16, %c0_27] : memref<2x32x64xf32, #tpu.memory_space<vmem>>, vector<1x8x64xf32>
    %79 = vector.shape_cast %78 : vector<1x8x64xf32> to vector<8x64xf32>
    %80 = vector.shape_cast %77 : vector<8x64xf32> to vector<1x8x64xf32>
    tpu.vector_store %arg5[%c0_26, %c16, %c0_27], %80 {strides = array<i32>} : memref<2x32x64xf32, #tpu.memory_space<vmem>>, vector<1x8x64xf32>,
    %81 = vector.extract_strided_slice %12 {offsets = [0, 24], sizes = [64, 8], strides = [1, 1]} : vector<64x32xf32> to vector<64x8xf32>
    %82 = vector.extract_strided_slice %13 {offsets = [24, 0], sizes = [8, 64], strides = [1, 1]} : vector<32x64xf32> to vector<8x64xf32>
    %cst_28 = arith.constant dense<0.000000e+00> : vector<64x64xf32>
    %83 = tpu.matmul %81, %82, %cst_28 {dimension_numbers = #tpu.dot_dimension_numbers<[1], [0], [0], [1], [0, 0, 1, 1], [], []>} : vector<64x8xf32>, vector<8x64xf32>, vector<64x64xf32> -> vector<64x64xf32>
    %cst_29 = arith.constant dense<0xFF800000> : vector<64xf32>
    %84 = vector.multi_reduction <maximumf>, %83, %cst_29 [1] : vector<64x64xf32> to vector<64xf32>
    %85 = vector.shape_cast %84 : vector<64xf32> to vector<64x1xf32>
    %86 = vector.broadcast %85 : vector<64x1xf32> to vector<64x64xf32>
    %87 = arith.subf %83, %86 : vector<64x64xf32>
    %88 = math.exp %87 : vector<64x64xf32>
    %cst_30 = arith.constant dense<0.000000e+00> : vector<64xf32>
    %89 = vector.multi_reduction <add>, %88, %cst_30 [1] : vector<64x64xf32> to vector<64xf32>
    %90 = vector.shape_cast %89 : vector<64xf32> to vector<64x1xf32>
    %91 = tpu.reciprocal %90 {approx = true} : vector<64x1xf32> -> vector<64x1xf32>
    %92 = vector.broadcast %91 : vector<64x1xf32> to vector<64x64xf32>
    %93 = arith.mulf %88, %92 : vector<64x64xf32>
    %94 = vector.extract_strided_slice %14 {offsets = [24, 0], sizes = [8, 64], strides = [1, 1]} : vector<32x64xf32> to vector<8x64xf32>
    %cst_31 = arith.constant dense<0.000000e+00> : vector<8x64xf32>
    %95 = tpu.matmul %94, %93, %cst_31 {dimension_numbers = #tpu.dot_dimension_numbers<[1], [1], [0], [0], [0, 0, 1, 0], [], []>} : vector<8x64xf32>, vector<64x64xf32>, vector<8x64xf32> -> vector<8x64xf32>
    %96 = vector.broadcast %0 : f32 to vector<8x64xf32>
    %97 = arith.mulf %96, %95 : vector<8x64xf32>
    %98 = vector.extract_strided_slice %4 {offsets = [24, 0], sizes = [8, 64], strides = [1, 1]} : vector<32x64xf32> to vector<8x64xf32>
    %99 = arith.addf %97, %98 : vector<8x64xf32>
    %c0_32 = arith.constant 0 : index
    %c24 = arith.constant 24 : index
    %c0_33 = arith.constant 0 : index
    %100 = vector.load %arg5[%c0_32, %c24, %c0_33] : memref<2x32x64xf32, #tpu.memory_space<vmem>>, vector<1x8x64xf32>
    %101 = vector.shape_cast %100 : vector<1x8x64xf32> to vector<8x64xf32>
    %102 = vector.shape_cast %99 : vector<8x64xf32> to vector<1x8x64xf32>
    tpu.vector_store %arg5[%c0_32, %c24, %c0_33], %102 {strides = array<i32>} : memref<2x32x64xf32, #tpu.memory_space<vmem>>, vector<1x8x64xf32>,
    %c1 = arith.constant 1 : index
    %c0_34 = arith.constant 0 : index
    %c0_35 = arith.constant 0 : index
    %103 = vector.load %arg1[%c1, %c0_34, %c0_35] : memref<2x32x64xf32, #tpu.memory_space<vmem>>, vector<1x32x64xf32>
    %104 = vector.shape_cast %103 : vector<1x32x64xf32> to vector<32x64xf32>
    %105 = arith.truncf %104 : vector<32x64xf32> to vector<32x64xbf16>
    %cst_36 = arith.constant dense<0.000000e+00> : vector<96x64xf32>
    %106 = tpu.matmul %1, %105, %cst_36 {dimension_numbers = #tpu.dot_dimension_numbers<[1], [0], [0], [1], [0, 0, 1, 1], [], []>} : vector<96x32xbf16>, vector<32x64xbf16>, vector<96x64xf32> -> vector<96x64xf32>
    %107 = vector.broadcast %2 : vector<96x1xf32> to vector<96x64xf32>
    %108 = arith.addf %106, %107 : vector<96x64xf32>
    %109 = vector.extract_strided_slice %108 {offsets = [0, 0], sizes = [32, 64], strides = [1, 1]} : vector<96x64xf32> to vector<32x64xf32>
    %cst_37 = arith.constant 0.353553385 : f32
    %110 = vector.broadcast %cst_37 : f32 to vector<32x64xf32>
    %111 = arith.mulf %109, %110 : vector<32x64xf32>
    %112 = tpu.transpose %111, [1, 0] : vector<32x64xf32> -> vector<64x32xf32>
    %113 = vector.extract_strided_slice %108 {offsets = [32, 0], sizes = [32, 64], strides = [1, 1]} : vector<96x64xf32> to vector<32x64xf32>
    %114 = vector.extract_strided_slice %108 {offsets = [64, 0], sizes = [32, 64], strides = [1, 1]} : vector<96x64xf32> to vector<32x64xf32>
    %115 = vector.extract_strided_slice %112 {offsets = [0, 0], sizes = [64, 8], strides = [1, 1]} : vector<64x32xf32> to vector<64x8xf32>
    %116 = vector.extract_strided_slice %113 {offsets = [0, 0], sizes = [8, 64], strides = [1, 1]} : vector<32x64xf32> to vector<8x64xf32>
    %cst_38 = arith.constant dense<0.000000e+00> : vector<64x64xf32>
    %117 = tpu.matmul %115, %116, %cst_38 {dimension_numbers = #tpu.dot_dimension_numbers<[1], [0], [0], [1], [0, 0, 1, 1], [], []>} : vector<64x8xf32>, vector<8x64xf32>, vector<64x64xf32> -> vector<64x64xf32>
    %cst_39 = arith.constant dense<0xFF800000> : vector<64xf32>
    %118 = vector.multi_reduction <maximumf>, %117, %cst_39 [1] : vector<64x64xf32> to vector<64xf32>
    %119 = vector.shape_cast %118 : vector<64xf32> to vector<64x1xf32>
    %120 = vector.broadcast %119 : vector<64x1xf32> to vector<64x64xf32>
    %121 = arith.subf %117, %120 : vector<64x64xf32>
    %122 = math.exp %121 : vector<64x64xf32>
    %cst_40 = arith.constant dense<0.000000e+00> : vector<64xf32>
    %123 = vector.multi_reduction <add>, %122, %cst_40 [1] : vector<64x64xf32> to vector<64xf32>
    %124 = vector.shape_cast %123 : vector<64xf32> to vector<64x1xf32>
    %125 = tpu.reciprocal %124 {approx = true} : vector<64x1xf32> -> vector<64x1xf32>
    %126 = vector.broadcast %125 : vector<64x1xf32> to vector<64x64xf32>
    %127 = arith.mulf %122, %126 : vector<64x64xf32>
    %128 = vector.extract_strided_slice %114 {offsets = [0, 0], sizes = [8, 64], strides = [1, 1]} : vector<32x64xf32> to vector<8x64xf32>
    %cst_41 = arith.constant dense<0.000000e+00> : vector<8x64xf32>
    %129 = tpu.matmul %128, %127, %cst_41 {dimension_numbers = #tpu.dot_dimension_numbers<[1], [1], [0], [0], [0, 0, 1, 0], [], []>} : vector<8x64xf32>, vector<64x64xf32>, vector<8x64xf32> -> vector<8x64xf32>
    %130 = vector.broadcast %0 : f32 to vector<8x64xf32>
    %131 = arith.mulf %130, %129 : vector<8x64xf32>
    %132 = vector.extract_strided_slice %104 {offsets = [0, 0], sizes = [8, 64], strides = [1, 1]} : vector<32x64xf32> to vector<8x64xf32>
    %133 = arith.addf %131, %132 : vector<8x64xf32>
    %c1_42 = arith.constant 1 : index
    %c0_43 = arith.constant 0 : index
    %c0_44 = arith.constant 0 : index
    %134 = vector.load %arg5[%c1_42, %c0_43, %c0_44] : memref<2x32x64xf32, #tpu.memory_space<vmem>>, vector<1x8x64xf32>
    %135 = vector.shape_cast %134 : vector<1x8x64xf32> to vector<8x64xf32>
    %136 = vector.shape_cast %133 : vector<8x64xf32> to vector<1x8x64xf32>
    tpu.vector_store %arg5[%c1_42, %c0_43, %c0_44], %136 {strides = array<i32>} : memref<2x32x64xf32, #tpu.memory_space<vmem>>, vector<1x8x64xf32>,
    %137 = vector.extract_strided_slice %112 {offsets = [0, 8], sizes = [64, 8], strides = [1, 1]} : vector<64x32xf32> to vector<64x8xf32>
    %138 = vector.extract_strided_slice %113 {offsets = [8, 0], sizes = [8, 64], strides = [1, 1]} : vector<32x64xf32> to vector<8x64xf32>
    %cst_45 = arith.constant dense<0.000000e+00> : vector<64x64xf32>
    %139 = tpu.matmul %137, %138, %cst_45 {dimension_numbers = #tpu.dot_dimension_numbers<[1], [0], [0], [1], [0, 0, 1, 1], [], []>} : vector<64x8xf32>, vector<8x64xf32>, vector<64x64xf32> -> vector<64x64xf32>
    %cst_46 = arith.constant dense<0xFF800000> : vector<64xf32>
    %140 = vector.multi_reduction <maximumf>, %139, %cst_46 [1] : vector<64x64xf32> to vector<64xf32>
    %141 = vector.shape_cast %140 : vector<64xf32> to vector<64x1xf32>
    %142 = vector.broadcast %141 : vector<64x1xf32> to vector<64x64xf32>
    %143 = arith.subf %139, %142 : vector<64x64xf32>
    %144 = math.exp %143 : vector<64x64xf32>
    %cst_47 = arith.constant dense<0.000000e+00> : vector<64xf32>
    %145 = vector.multi_reduction <add>, %144, %cst_47 [1] : vector<64x64xf32> to vector<64xf32>
    %146 = vector.shape_cast %145 : vector<64xf32> to vector<64x1xf32>
    %147 = tpu.reciprocal %146 {approx = true} : vector<64x1xf32> -> vector<64x1xf32>
    %148 = vector.broadcast %147 : vector<64x1xf32> to vector<64x64xf32>
    %149 = arith.mulf %144, %148 : vector<64x64xf32>
    %150 = vector.extract_strided_slice %114 {offsets = [8, 0], sizes = [8, 64], strides = [1, 1]} : vector<32x64xf32> to vector<8x64xf32>
    %cst_48 = arith.constant dense<0.000000e+00> : vector<8x64xf32>
    %151 = tpu.matmul %150, %149, %cst_48 {dimension_numbers = #tpu.dot_dimension_numbers<[1], [1], [0], [0], [0, 0, 1, 0], [], []>} : vector<8x64xf32>, vector<64x64xf32>, vector<8x64xf32> -> vector<8x64xf32>
    %152 = vector.broadcast %0 : f32 to vector<8x64xf32>
    %153 = arith.mulf %152, %151 : vector<8x64xf32>
    %154 = vector.extract_strided_slice %104 {offsets = [8, 0], sizes = [8, 64], strides = [1, 1]} : vector<32x64xf32> to vector<8x64xf32>
    %155 = arith.addf %153, %154 : vector<8x64xf32>
    %c1_49 = arith.constant 1 : index
    %c8_50 = arith.constant 8 : index
    %c0_51 = arith.constant 0 : index
    %156 = vector.load %arg5[%c1_49, %c8_50, %c0_51] : memref<2x32x64xf32, #tpu.memory_space<vmem>>, vector<1x8x64xf32>
    %157 = vector.shape_cast %156 : vector<1x8x64xf32> to vector<8x64xf32>
    %158 = vector.shape_cast %155 : vector<8x64xf32> to vector<1x8x64xf32>
    tpu.vector_store %arg5[%c1_49, %c8_50, %c0_51], %158 {strides = array<i32>} : memref<2x32x64xf32, #tpu.memory_space<vmem>>, vector<1x8x64xf32>,
    %159 = vector.extract_strided_slice %112 {offsets = [0, 16], sizes = [64, 8], strides = [1, 1]} : vector<64x32xf32> to vector<64x8xf32>
    %160 = vector.extract_strided_slice %113 {offsets = [16, 0], sizes = [8, 64], strides = [1, 1]} : vector<32x64xf32> to vector<8x64xf32>
    %cst_52 = arith.constant dense<0.000000e+00> : vector<64x64xf32>
    %161 = tpu.matmul %159, %160, %cst_52 {dimension_numbers = #tpu.dot_dimension_numbers<[1], [0], [0], [1], [0, 0, 1, 1], [], []>} : vector<64x8xf32>, vector<8x64xf32>, vector<64x64xf32> -> vector<64x64xf32>
    %cst_53 = arith.constant dense<0xFF800000> : vector<64xf32>
    %162 = vector.multi_reduction <maximumf>, %161, %cst_53 [1] : vector<64x64xf32> to vector<64xf32>
    %163 = vector.shape_cast %162 : vector<64xf32> to vector<64x1xf32>
    %164 = vector.broadcast %163 : vector<64x1xf32> to vector<64x64xf32>
    %165 = arith.subf %161, %164 : vector<64x64xf32>
    %166 = math.exp %165 : vector<64x64xf32>
    %cst_54 = arith.constant dense<0.000000e+00> : vector<64xf32>
    %167 = vector.multi_reduction <add>, %166, %cst_54 [1] : vector<64x64xf32> to vector<64xf32>
    %168 = vector.shape_cast %167 : vector<64xf32> to vector<64x1xf32>
    %169 = tpu.reciprocal %168 {approx = true} : vector<64x1xf32> -> vector<64x1xf32>
    %170 = vector.broadcast %169 : vector<64x1xf32> to vector<64x64xf32>
    %171 = arith.mulf %166, %170 : vector<64x64xf32>
    %172 = vector.extract_strided_slice %114 {offsets = [16, 0], sizes = [8, 64], strides = [1, 1]} : vector<32x64xf32> to vector<8x64xf32>
    %cst_55 = arith.constant dense<0.000000e+00> : vector<8x64xf32>
    %173 = tpu.matmul %172, %171, %cst_55 {dimension_numbers = #tpu.dot_dimension_numbers<[1], [1], [0], [0], [0, 0, 1, 0], [], []>} : vector<8x64xf32>, vector<64x64xf32>, vector<8x64xf32> -> vector<8x64xf32>
    %174 = vector.broadcast %0 : f32 to vector<8x64xf32>
    %175 = arith.mulf %174, %173 : vector<8x64xf32>
    %176 = vector.extract_strided_slice %104 {offsets = [16, 0], sizes = [8, 64], strides = [1, 1]} : vector<32x64xf32> to vector<8x64xf32>
    %177 = arith.addf %175, %176 : vector<8x64xf32>
    %c1_56 = arith.constant 1 : index
    %c16_57 = arith.constant 16 : index
    %c0_58 = arith.constant 0 : index
    %178 = vector.load %arg5[%c1_56, %c16_57, %c0_58] : memref<2x32x64xf32, #tpu.memory_space<vmem>>, vector<1x8x64xf32>
    %179 = vector.shape_cast %178 : vector<1x8x64xf32> to vector<8x64xf32>
    %180 = vector.shape_cast %177 : vector<8x64xf32> to vector<1x8x64xf32>
    tpu.vector_store %arg5[%c1_56, %c16_57, %c0_58], %180 {strides = array<i32>} : memref<2x32x64xf32, #tpu.memory_space<vmem>>, vector<1x8x64xf32>,
    %181 = vector.extract_strided_slice %112 {offsets = [0, 24], sizes = [64, 8], strides = [1, 1]} : vector<64x32xf32> to vector<64x8xf32>
    %182 = vector.extract_strided_slice %113 {offsets = [24, 0], sizes = [8, 64], strides = [1, 1]} : vector<32x64xf32> to vector<8x64xf32>
    %cst_59 = arith.constant dense<0.000000e+00> : vector<64x64xf32>
    %183 = tpu.matmul %181, %182, %cst_59 {dimension_numbers = #tpu.dot_dimension_numbers<[1], [0], [0], [1], [0, 0, 1, 1], [], []>} : vector<64x8xf32>, vector<8x64xf32>, vector<64x64xf32> -> vector<64x64xf32>
    %cst_60 = arith.constant dense<0xFF800000> : vector<64xf32>
    %184 = vector.multi_reduction <maximumf>, %183, %cst_60 [1] : vector<64x64xf32> to vector<64xf32>
    %185 = vector.shape_cast %184 : vector<64xf32> to vector<64x1xf32>
    %186 = vector.broadcast %185 : vector<64x1xf32> to vector<64x64xf32>
    %187 = arith.subf %183, %186 : vector<64x64xf32>
    %188 = math.exp %187 : vector<64x64xf32>
    %cst_61 = arith.constant dense<0.000000e+00> : vector<64xf32>
    %189 = vector.multi_reduction <add>, %188, %cst_61 [1] : vector<64x64xf32> to vector<64xf32>
    %190 = vector.shape_cast %189 : vector<64xf32> to vector<64x1xf32>
    %191 = tpu.reciprocal %190 {approx = true} : vector<64x1xf32> -> vector<64x1xf32>
    %192 = vector.broadcast %191 : vector<64x1xf32> to vector<64x64xf32>
    %193 = arith.mulf %188, %192 : vector<64x64xf32>
    %194 = vector.extract_strided_slice %114 {offsets = [24, 0], sizes = [8, 64], strides = [1, 1]} : vector<32x64xf32> to vector<8x64xf32>
    %cst_62 = arith.constant dense<0.000000e+00> : vector<8x64xf32>
    %195 = tpu.matmul %194, %193, %cst_62 {dimension_numbers = #tpu.dot_dimension_numbers<[1], [1], [0], [0], [0, 0, 1, 0], [], []>} : vector<8x64xf32>, vector<64x64xf32>, vector<8x64xf32> -> vector<8x64xf32>
    %196 = vector.broadcast %0 : f32 to vector<8x64xf32>
    %197 = arith.mulf %196, %195 : vector<8x64xf32>
    %198 = vector.extract_strided_slice %104 {offsets = [24, 0], sizes = [8, 64], strides = [1, 1]} : vector<32x64xf32> to vector<8x64xf32>
    %199 = arith.addf %197, %198 : vector<8x64xf32>
    %c1_63 = arith.constant 1 : index
    %c24_64 = arith.constant 24 : index
    %c0_65 = arith.constant 0 : index
    %200 = vector.load %arg5[%c1_63, %c24_64, %c0_65] : memref<2x32x64xf32, #tpu.memory_space<vmem>>, vector<1x8x64xf32>
    %201 = vector.shape_cast %200 : vector<1x8x64xf32> to vector<8x64xf32>
    %202 = vector.shape_cast %199 : vector<8x64xf32> to vector<1x8x64xf32>
    tpu.vector_store %arg5[%c1_63, %c24_64, %c0_65], %202 {strides = array<i32>} : memref<2x32x64xf32, #tpu.memory_space<vmem>>, vector<1x8x64xf32>,
    return
  }
  func.func @transform_0(%arg0: i32) -> (i32, i32, i32) {
    %c0_i32 = arith.constant 0 : i32
    %c0_i32_0 = arith.constant 0 : i32
    %c0_i32_1 = arith.constant 0 : i32
    %c0_i32_2 = arith.constant 0 : i32
    return %c0_i32, %c0_i32_0, %c0_i32_1 : i32, i32, i32
  }
  func.func @transform_1(%arg0: i32) -> (i32, i32) {
    %c0_i32 = arith.constant 0 : i32
    %c0_i32_0 = arith.constant 0 : i32
    %c0_i32_1 = arith.constant 0 : i32
    return %c0_i32, %c0_i32_0 : i32, i32
  }
  func.func @transform_2(%arg0: i32) -> (i32, i32) {
    %c0_i32 = arith.constant 0 : i32
    %c0_i32_0 = arith.constant 0 : i32
    %c0_i32_1 = arith.constant 0 : i32
    return %c0_i32, %c0_i32_0 : i32, i32
  }
  func.func @transform_3(%arg0: i32) -> (i32, i32) {
    %c0_i32 = arith.constant 0 : i32
    %c0_i32_0 = arith.constant 0 : i32
    %c0_i32_1 = arith.constant 0 : i32
    return %c0_i32, %c0_i32_0 : i32, i32
  }
  func.func @transform_4(%arg0: i32) -> (i32, i32, i32) {
    %c0_i32 = arith.constant 0 : i32
    %c0_i32_0 = arith.constant 0 : i32
    %c0_i32_1 = arith.constant 0 : i32
    %c0_i32_2 = arith.constant 0 : i32
    return %c0_i32, %c0_i32_0, %c0_i32_1 : i32, i32, i32
  }
}

</mosaic_0001>

<bundles_post_ra>
// kernel: multi_head_self_attention.1
= control target key start
LH: loop header
LB: loop body
LE: loop exit
PB: predicated region body
PF: predicated region fallthrough
CT: control target
= control target key end

     0   :  { %v4022_v3 = vmov 0   ;;  %vm140_vm0 = vcmask 261120   ;;  %vm276_vm1 = vcmask 64512   ;;  %vm406_vm2 = vcmask 523264   ;;  %s4023_s19 = smov 120   ;;  %s4024_s24 = smov 112   ;;  %s5160_s0 = inlined_call_operand.vmem [shape: f32[2,32,64], index: 0, kind: input, shape index: {}]   ;;  %s5161_s1 = inlined_call_operand.vmem [shape: bf16[96,32], index: 1, kind: input, shape index: {}]   ;;  %s5162_s2 = inlined_call_operand.vmem [shape: f32[96,1], index: 2, kind: input, shape index: {}]   ;;  %s5163_s3 = inlined_call_operand.<no memory space> [shape: f32[1,1], index: 3, kind: input, shape index: {}]   ;;  %s5164_s4 = inlined_call_operand.vmem [shape: f32[2,32,64], index: 4, kind: output, shape index: {}]  }
   0x1   :  { %v4057_v0 = vld [vmem:[%s5160_s0] sm:$0xff]  ;;  %v45_v1 = vld [vmem:[%s5160_s0 + $0x8] sm:$0xff]  ;;  %v46_v2 = vld [vmem:[%s5160_s0 + $0x10] sm:$0xff]  ;;  %3745 = vset.pattern.permute.xlu0 %v4022_v3  ;;  %3746 = vset.pattern.permute.xlu1 %v4022_v3  ;;  %vm4026_vm3 = vmmov 0   ;;  %s4028_s6 = smov 104  }
   0x2   :  { %v48_v4 = vpack.c.bf16 %v45_v1, %v4057_v0  ;;  %v47_v5 = vld [vmem:[%s5160_s0 + $0x18] sm:$0xff]  ;;  %v3747_v7 = vld [vmem:[%s5161_s1] sm:$0xff]   ;;  %v3748_v9 = vld [vmem:[%s5161_s1 + $0x8] sm:$0xff]  }
   0x3   :  { %v49_v6 = vpack.c.bf16 %v47_v5, %v46_v2  ;;  %3318 = vmatprep.mubr.msk.bf16.mxu0 %vm140_vm0, %v3747_v7  ;;  %v32_v8 = vld [vmem:[%s5162_s2] sm:$0xff]  ;;  %v33_v10 = vld [vmem:[%s5162_s2 + $0x8] sm:$0xff]  ;;  %v34_v11 = vld [vmem:[%s5162_s2 + $0x10] sm:$0xff] }
   0x4   :  { %3314 = vmatprep.subr.bf16.mxu0 %v48_v4  ;;  %52 = vperm.xlu0 %3745, %v32_v8   ;;  %v3749_v12 = vld [vmem:[%s5161_s1 + $0x10] sm:$0xff]   ;;  %v35_v13 = vld [vmem:[%s5162_s2 + $0x18] sm:$0xff]  ;;  %v36_v14 = vld [vmem:[%s5162_s2 + $0x20] sm:$0xff] }
   0x5   :  { %3315 = vmatpush3.bf16.msra.mxu0 %v48_v4  ;;  %62 = vperm.xlu1 %3746, %v34_v11   ;;  %v3750_v15 = vld [vmem:[%s5161_s1 + $0x18] sm:$0xff]   ;;  %v3751_v46 = vld [vmem:[%s5161_s1 + $0x20] sm:$0xff]   ;;  %v3752_v47 = vld [vmem:[%s5161_s1 + $0x28] sm:$0xff]  }
   0x6   :  { %3316 = vmatprep.subr.bf16.mxu0 %v49_v6  ;;  %v37_v1 = vld [vmem:[%s5162_s2 + $0x28] sm:$0xff]  ;;  %vm4272_vm4 = vmpackc.low %vm406_vm2, %vm406_vm2 }
   0x8   :  { %57 = vperm.xlu0 %3745, %v33_v10  }
   0x9   :  { %3317 = vmatpush3.bf16.msra.mxu0 %v49_v6  ;;  %67 = vperm.xlu1 %3746, %v35_v13  }
   0xc   :  { %3319 = vmatmul.mubr.msk.bf16.vlgmr.msra.gmra.mrb[0].mxu0 %vm140_vm0, %v3748_v9  ;;  %72 = vperm.xlu0 %3745, %v36_v14  }
   0xd   :  { %3322 = vmatprep.mubr.msk.bf16.mxu0 %vm140_vm0, %v3749_v12 }
  0x14   :  { %3323 = vmatmul.mubr.msk.bf16.gmra.mrb[4].mxu0 %vm140_vm0, %v3750_v15 }
  0x15   :  { %3326 = vmatprep.mubr.msk.bf16.mxu0 %vm140_vm0, %v3751_v46 }
  0x1c   :  { %3327 = vmatmul.mubr.msk.bf16.gmra.mrb[8].mxu0 %vm140_vm0, %v3752_v47 }
  0x83   :  { %v4100_v16 = vpop.permute.xlu0 %52 }
  0x84   :  { %v4102_v19 = vpop.permute.xlu1 %62 }
  0x87   :  { %v4105_v22 = vpop.permute.xlu0 %57 }
  0x88   :  { %v4109_v27 = vpop.permute.xlu1 %67 }
  0x8b   :  { %v4113_v30 = vpop.permute.xlu0 %72 }
  0xdf   :  { %v3320_v17 = vpop.f32.mrb[0].mxu0 }
  0xe0   :  { %v193_v18 = vpop.f32.mrb[1].mxu0  ;;  %v202_v26 = vadd.f32 %v3320_v17, %v4102_v19 }
  0xe1   :  { %v194_v20 = vadd.f32 %v193_v18, %v4100_v16  ;;  %v3321_v21 = vpop.f32.mrb[2].mxu0 }
  0xe2   :  { %v196_v23 = vpop.f32.mrb[3].mxu0  ;;  %v242_v35 = vmul.f32 0.35355338, %v202_v26  ;;  %v205_v36 = vadd.f32 %v3321_v21, %v4109_v27 }
  0xe3   :  { %v240_v24 = vmul.f32 0.35355338, %v194_v20  ;;  %v197_v25 = vadd.f32 %v196_v23, %v4105_v22 }
  0xe4   :  { %v243_v37 = vmul.f32 0.35355338, %v205_v36 }
  0xe5   :  { %244 = vxpose.xlu1.b32.start [1/4] (short) (narrow) %v240_v24, 64  ;;  %v241_v28 = vmul.f32 0.35355338, %v197_v25 }
  0xe7   :  { %v4111_v29 = vpop.f32.mrb[4].mxu0 }
  0xe8   :  { %v209_v31 = vpop.f32.mrb[5].mxu0 }
  0xe9   :  { %v210_v32 = vadd.f32 %v209_v31, %v4113_v30  ;;  %245 = vxpose.xlu1.b32.cont [2/4] (short) (narrow) %v241_v28, 64  ;;  %v4116_v33 = vpop.f32.mrb[6].mxu0 }
  0xea   :  { %v4118_v34 = vpop.f32.mrb[7].mxu0 }
  0xeb   :  { %3330 = vmatprep.subr.mxu1 %v210_v32 }
  0xec   :  { %3331 = vmatpush3.msra.mxu1 %v210_v32 }
  0xed   :  { %246 = vxpose.xlu1.b32.cont [3/4] (short) (narrow) %v242_v35, 64 }
  0xf1   :  { %247 = vxpose.xlu1.b32.end [4/4] (short) (narrow) %v243_v37, 64 }
 0x165   :  { %v4121_v38 = vpop.trf.xlu1 }
 0x166   :  { %3332 = vmatprep.mubr.msk.f32.mxu1 %vm276_vm1, %v4121_v38 }
 0x169   :  { %v4125_v39 = vpop.trf.xlu1 }
 0x16a   :  { %3333 = vmatmul.mubr.msk.f32.vlgmr.msra.gmra.mrb[0].mxu1 %vm276_vm1, %v4125_v39 }
 0x16d   :  { %v4129_v40 = vpop.trf.xlu1 }
 0x16e   :  { %3335 = vmatprep.mubr.msk.f32.mxu1 %vm276_vm1, %v4129_v40 }
 0x171   :  { %v4133_v41 = vpop.trf.xlu1 }
 0x172   :  { %3336 = vmatmul.mubr.msk.f32.gmra.mrb[2].mxu1 %vm276_vm1, %v4133_v41 }
 0x175   :  { %v4137_v42 = vpop.trf.xlu1 }
 0x176   :  { %3338 = vmatprep.mubr.msk.f32.mxu1 %vm276_vm1, %v4137_v42 }
 0x179   :  { %v4141_v43 = vpop.trf.xlu1 }
 0x17a   :  { %3339 = vmatmul.mubr.msk.f32.gmra.mrb[4].mxu1 %vm276_vm1, %v4141_v43 }
 0x17d   :  { %v4145_v44 = vpop.trf.xlu1 }
 0x17e   :  { %3341 = vmatprep.mubr.msk.f32.mxu1 %vm276_vm1, %v4145_v44 }
 0x181   :  { %v4149_v45 = vpop.trf.xlu1 }
 0x182   :  { %3342 = vmatmul.mubr.msk.f32.gmra.mrb[6].mxu1 %vm276_vm1, %v4149_v45 }
 0x23d   :  { %v3334_v48 = vpop.f32.mrb[0].mxu1 }
 0x23e   :  { %v367_v49 = vpop.f32.mrb[1].mxu1  ;;  %v410_v50 = vsel %vm406_vm2, %v3334_v48, -inf }
 0x23f   :  { %411 = vmax.xlane.f32.xlu0 %v410_v50  ;;  %v407_v51 = vsel %vm406_vm2, %v367_v49, -inf }
 0x243   :  { %408 = vmax.xlane.f32.xlu0 %v407_v51  ;;  %v40_v51 = vld [vmem:[%s5162_s2 + $0x40] sm:$0xff] }
 0x245   :  { %v3337_v52 = vpop.f32.mrb[2].mxu1 }
 0x246   :  { %v377_v53 = vpop.f32.mrb[3].mxu1  ;;  %v416_v54 = vsel %vm406_vm2, %v3337_v52, -inf }
 0x247   :  { %417 = vmax.xlane.f32.xlu0 %v416_v54  ;;  %v413_v55 = vsel %vm406_vm2, %v377_v53, -inf }
 0x24b   :  { %414 = vmax.xlane.f32.xlu0 %v413_v55  ;;  %v4215_v55 = vpop.f32.mrb[8].mxu0 }
 0x24d   :  { %v3340_v56 = vpop.f32.mrb[4].mxu1 }
 0x24e   :  { %v387_v57 = vpop.f32.mrb[5].mxu1  ;;  %v422_v58 = vsel %vm406_vm2, %v3340_v56, -inf }
 0x24f   :  { %423 = vmax.xlane.f32.xlu0 %v422_v58  ;;  %v419_v59 = vsel %vm406_vm2, %v387_v57, -inf }
 0x253   :  { %420 = vmax.xlane.f32.xlu0 %v419_v59 }
 0x255   :  { %v3343_v60 = vpop.f32.mrb[6].mxu1 }
 0x256   :  { %v397_v61 = vpop.f32.mrb[7].mxu1  ;;  %v428_v62 = vsel %vm406_vm2, %v3343_v60, -inf }
 0x257   :  { %429 = vmax.xlane.f32.xlu0 %v428_v62  ;;  %v425_v63 = vsel %vm406_vm2, %v397_v61, -inf }
 0x258   :  { %426 = vmax.xlane.f32.xlu1 %v425_v63 }
 0x269   :  { %610 = vrot.lane.b32.xlu1 %v4149_v45, %s4023_s19 }
 0x26d   :  { %77 = vperm.xlu0 %3745, %v37_v1  }
 0x271   :  { %596 = vrot.lane.b32.xlu0 %v4121_v38, %s4023_s19 }
 0x275   :  { %598 = vrot.lane.b32.xlu0 %v4125_v39, %s4023_s19 }
 0x279   :  { %600 = vrot.lane.b32.xlu0 %v4129_v40, %s4023_s19 }
 0x27d   :  { %602 = vrot.lane.b32.xlu0 %v4133_v41, %s4023_s19 }
 0x281   :  { %604 = vrot.lane.b32.xlu0 %v4137_v42, %s4023_s19 }
 0x285   :  { %606 = vrot.lane.b32.xlu0 %v4141_v43, %s4023_s19 }
 0x289   :  { %608 = vrot.lane.b32.xlu0 %v4145_v44, %s4023_s19 }
 0x2cc   :  { %v412_v2 = vpop.xlane.xlu0 %411 }
 0x2cd   :  { %v432_v3 = vsub.f32 %v3334_v48, %v412_v2 }
 0x2cf   :  { %v441_v4 = vmul.f32 1.442695, %v432_v3  ;;  %v4025_v3 = vmov 0.0|0.0  }
 0x2d0   :  { %v409_v5 = vpop.xlane.xlu0 %408  ;;  %3610 = vmatprep.subr.bf16.mxu1 %v4025_v3 }
 0x2d1   :  { %3753 = vpow2.f32 %v441_v4  ;;  %v431_v6 = vsub.f32 %v367_v49, %v409_v5 }
 0x2d3   :  { %v439_v7 = vmul.f32 1.442695, %v431_v6 }
 0x2d4   :  { %v418_v8 = vpop.xlane.xlu0 %417 }
 0x2d5   :  { %3755 = vpow2.f32 %v439_v7  ;;  %v434_v9 = vsub.f32 %v3337_v52, %v418_v8  ;;  %v38_v8 = vld [vmem:[%s5162_s2 + $0x30] sm:$0xff] }
 0x2d7   :  { %v445_v10 = vmul.f32 1.442695, %v434_v9  ;;  %v4027_v9 = vmov 0.0  }
 0x2d8   :  { %v415_v11 = vpop.xlane.xlu0 %414  ;;  %3360 = vmatprep.mubr.msk.f32.mxu1 %vm4026_vm3, %v4027_v9 }
 0x2d9   :  { %3757 = vpow2.f32 %v445_v10  ;;  %v433_v12 = vsub.f32 %v377_v53, %v415_v11 }
 0x2db   :  { %v4188_v13 = vpop.eup %3753  ;;  %v443_v14 = vmul.f32 1.442695, %v433_v12 }
 0x2dc   :  { %v424_v15 = vpop.xlane.xlu0 %423  ;;  %v458_v17 = vsel %vm406_vm2, %v4188_v13, 0.0 }
 0x2dd   :  { %3759 = vpow2.f32 %v443_v14  ;;  %v436_v18 = vsub.f32 %v3340_v56, %v424_v15  ;;  %459 = vadd.xlane.f32.xlu1 %v458_v17  ;;  %v4217_v56 = vpop.f32.mrb[9].mxu0 }
 0x2de   :  { %v4264_v10 = vpop.f32.mrb[10].mxu0 }
 0x2df   :  { %v4192_v20 = vpop.eup %3755  ;;  %v449_v21 = vmul.f32 1.442695, %v436_v18  ;;  %v4266_v11 = vpop.f32.mrb[11].mxu0 }
 0x2e0   :  { %v421_v23 = vpop.xlane.xlu0 %420  ;;  %v455_v24 = vsel %vm406_vm2, %v4192_v20, 0.0 }
 0x2e1   :  { %3761 = vpow2.f32 %v449_v21  ;;  %v435_v25 = vsub.f32 %v387_v57, %v421_v23  ;;  %456 = vadd.xlane.f32.xlu0 %v455_v24 }
 0x2e3   :  { %v4196_v26 = vpop.eup %3757  ;;  %v447_v28 = vmul.f32 1.442695, %v435_v25 }
 0x2e4   :  { %v430_v31 = vpop.xlane.xlu0 %429  ;;  %v464_v32 = vsel %vm406_vm2, %v4196_v26, 0.0 }
 0x2e5   :  { %3763 = vpow2.f32 %v447_v28  ;;  %v438_v35 = vsub.f32 %v3343_v60, %v430_v31  ;;  %465 = vadd.xlane.f32.xlu0 %v464_v32  ;;  %v427_v36 = vpop.xlane.xlu1 %426 }
 0x2e6   :  { %v437_v37 = vsub.f32 %v397_v61, %v427_v36 }
 0x2e7   :  { %v4200_v46 = vpop.eup %3759  ;;  %v453_v47 = vmul.f32 1.442695, %v438_v35 }
 0x2e8   :  { %v451_v48 = vmul.f32 1.442695, %v437_v37  ;;  %v461_v49 = vsel %vm406_vm2, %v4200_v46, 0.0 }
 0x2e9   :  { %3765 = vpow2.f32 %v453_v47  ;;  %462 = vadd.xlane.f32.xlu0 %v461_v49  ;;  %v611_v7 = vpop.permute.xlu1 %610 }
 0x2ea   :  { %3767 = vpow2.f32 %v451_v48 }
 0x2eb   :  { %v4204_v50 = vpop.eup %3761 }
 0x2ec   :  { %v4209_v52 = vpop.permute.xlu0 %77  ;;  %v470_v53 = vsel %vm406_vm2, %v4204_v50, 0.0 }
 0x2ed   :  { %v213_v54 = vadd.f32 %v4118_v34, %v4209_v52  ;;  %471 = vadd.xlane.f32.xlu0 %v470_v53 }
 0x2ee   :  { %92 = vperm.xlu1 %3746, %v40_v51  }
 0x2ef   :  { %v4219_v57 = vpop.eup %3763  ;;  %3363 = vmatprep.subr.mxu0 %v213_v54 }
 0x2f0   :  { %3364 = vmatpush3.msra.mxu0 %v213_v54  ;;  %v597_v58 = vpop.permute.xlu0 %596  ;;  %v467_v59 = vsel %vm406_vm2, %v4219_v57, 0.0 }
 0x2f1   :  { %468 = vadd.xlane.f32.xlu0 %v467_v59  ;;  %3365 = vmatprep.mubr.msk.f32.mxu0 %vm276_vm1, %v597_v58 }
 0x2f2   :  { %921 = vrot.lane.b32.xlu1 %v4121_v38, %s4024_s24  ;;  %3626 = vmatprep.subr.bf16.mxu0 %v4025_v3 }
 0x2f3   :  { %v4226_v34 = vpop.eup %3765 }
 0x2f4   :  { %v599_v60 = vpop.permute.xlu0 %598  ;;  %v476_v61 = vsel %vm406_vm2, %v4226_v34, 0.0  ;;  %v4230_v62 = vpop.eup %3767 }
 0x2f5   :  { %477 = vadd.xlane.f32.xlu0 %v476_v61  ;;  %3366 = vmatmul.mubr.msk.f32.vlgmr.msra.gmra.mrb[12].mxu0 %vm276_vm1, %v599_v60  ;;  %v473_v1 = vsel %vm406_vm2, %v4230_v62, 0.0 }
 0x2f6   :  { %923 = vrot.lane.b32.xlu1 %v4125_v39, %s4024_s24 }
 0x2f8   :  { %v601_v63 = vpop.permute.xlu0 %600 }
 0x2f9   :  { %3368 = vmatprep.mubr.msk.f32.mxu0 %vm276_vm1, %v601_v63  ;;  %474 = vadd.xlane.f32.xlu0 %v473_v1 }
 0x2fa   :  { %927 = vrot.lane.b32.xlu1 %v4133_v41, %s4024_s24 }
 0x2fc   :  { %v603_v2 = vpop.permute.xlu0 %602 }
 0x2fd   :  { %3369 = vmatmul.mubr.msk.f32.gmra.mrb[14].mxu0 %vm276_vm1, %v603_v2 }
 0x2fe   :  { %931 = vrot.lane.b32.xlu1 %v4141_v43, %s4024_s24 }
 0x300   :  { %v605_v4 = vpop.permute.xlu0 %604 }
 0x301   :  { %3371 = vmatprep.mubr.msk.f32.mxu0 %vm276_vm1, %v605_v4 }
 0x302   :  { %935 = vrot.lane.b32.xlu1 %v4149_v45, %s4024_s24 }
 0x304   :  { %v607_v5 = vpop.permute.xlu0 %606 }
 0x305   :  { %3372 = vmatmul.mubr.msk.f32.gmra.mrb[16].mxu0 %vm276_vm1, %v607_v5 }
 0x308   :  { %v609_v6 = vpop.permute.xlu0 %608 }
 0x309   :  { %3374 = vmatprep.mubr.msk.f32.mxu0 %vm276_vm1, %v609_v6 }
 0x30a   :  { %3375 = vmatmul.mubr.msk.f32.gmra.mrb[18].mxu0 %vm276_vm1, %v611_v7 }
 0x30b   :  { %3393 = vmatprep.mubr.msk.f32.mxu0 %vm4026_vm3, %v4027_v9 }
 0x30f   :  { %82 = vperm.xlu0 %3745, %v38_v8  }
 0x313   :  { %925 = vrot.lane.b32.xlu0 %v4129_v40, %s4024_s24 }
 0x317   :  { %929 = vrot.lane.b32.xlu0 %v4137_v42, %s4024_s24 }
 0x31b   :  { %933 = vrot.lane.b32.xlu0 %v4145_v44, %s4024_s24 }
 0x36a   :  { %v460_v12 = vpop.xlane.xlu1 %459 }
 0x36b   :  { %3769 = vrcp.f32 %v460_v12 }
 0x36e   :  { %v457_v14 = vpop.xlane.xlu0 %456 }
 0x36f   :  { %3771 = vrcp.f32 %v457_v14 }
 0x372   :  { %v466_v15 = vpop.xlane.xlu0 %465 }
 0x373   :  { %3773 = vrcp.f32 %v466_v15 }
 0x375   :  { %v3770_v18 = vpop.eup %3769 }
 0x376   :  { %v463_v17 = vpop.xlane.xlu0 %462  ;;  %v488_v23 = vmul.f32 %v3770_v18, %v4188_v13 }
 0x377   :  { %3775 = vrcp.f32 %v463_v17 }
 0x379   :  { %v3772_v21 = vpop.eup %3771 }
 0x37a   :  { %v487_v24 = vmul.f32 %v3772_v21, %v4192_v20  ;;  %v472_v25 = vpop.xlane.xlu0 %471 }
 0x37b   :  { %3777 = vrcp.f32 %v472_v25 }
 0x37c   :  { %v3611_v31 = vpack.c.bf16 %v488_v23, %v487_v24 }
 0x37d   :  { %v3774_v35 = vpop.eup %3773 }
 0x37e   :  { %v469_v32 = vpop.xlane.xlu0 %468  ;;  %3613 = vmatpush3.bf16.xpose.msk.msra.mxu1 %vm4272_vm4, %v3611_v31  ;;  %v490_v20 = vmul.f32 %v3774_v35, %v4196_v26  ;;  %v4286_v26 = vpop.permute.xlu1 %92 }
 0x37f   :  { %3779 = vrcp.f32 %v469_v32  ;;  %3614 = vmatprep.subr.bf16.mxu1 %v4025_v3  ;;  %v226_v4 = vadd.f32 %v4217_v56, %v4286_v26 }
 0x381   :  { %v3776_v13 = vpop.eup %3775 }
 0x382   :  { %v489_v36 = vmul.f32 %v3776_v13, %v4200_v46  ;;  %v478_v37 = vpop.xlane.xlu0 %477  ;;  %v922_v1 = vpop.permute.xlu1 %921 }
 0x383   :  { %3781 = vrcp.f32 %v478_v37 }
 0x384   :  { %v3615_v47 = vpack.c.bf16 %v490_v20, %v489_v36  ;;  %v41_v36 = vld [vmem:[%s5162_s2 + $0x48] sm:$0xff] }
 0x385   :  { %v3778_v49 = vpop.eup %3777 }
 0x386   :  { %v475_v48 = vpop.xlane.xlu0 %474  ;;  %3617 = vmatpush3.bf16.xpose.msk.msra.mxu1 %vm4272_vm4, %v3615_v47  ;;  %v492_v53 = vmul.f32 %v3778_v49, %v4204_v50  ;;  %v924_v2 = vpop.permute.xlu1 %923 }
 0x387   :  { %3783 = vrcp.f32 %v475_v48  ;;  %3618 = vmatprep.subr.bf16.mxu1 %v4025_v3 }
 0x389   :  { %v3780_v51 = vpop.eup %3779 }
 0x38a   :  { %v491_v54 = vmul.f32 %v3780_v51, %v4219_v57 }
 0x38c   :  { %v3619_v58 = vpack.c.bf16 %v492_v53, %v491_v54 }
 0x38d   :  { %v3782_v46 = vpop.eup %3781 }
 0x38e   :  { %3621 = vmatpush3.bf16.xpose.msk.msra.mxu1 %vm4272_vm4, %v3619_v58  ;;  %v494_v60 = vmul.f32 %v3782_v46, %v4226_v34  ;;  %v4293_v63 = vpop.permute.xlu0 %82  ;;  %v928_v34 = vpop.permute.xlu1 %927 }
 0x38f   :  { %3622 = vmatprep.subr.bf16.mxu1 %v4025_v3  ;;  %v218_v57 = vadd.f32 %v4111_v29, %v4293_v63 }
 0x391   :  { %v3784_v59 = vpop.eup %3783 }
 0x392   :  { %v493_v61 = vmul.f32 %v3784_v59, %v4230_v62  ;;  %v926_v5 = vpop.permute.xlu0 %925  ;;  %v932_v62 = vpop.permute.xlu1 %931 }
 0x394   :  { %v3623_v50 = vpack.c.bf16 %v494_v60, %v493_v61 }
 0x396   :  { %3625 = vmatpush3.bf16.xpose.msk.msra.mxu1 %vm4272_vm4, %v3623_v50  ;;  %v930_v29 = vpop.permute.xlu0 %929  ;;  %v936_v6 = vpop.permute.xlu1 %935 }
 0x397   :  { %3396 = vmatprep.subr.mxu1 %v218_v57 }
 0x39a   :  { %v934_v56 = vpop.permute.xlu0 %933 }
 0x39d   :  { %3361 = vmatmul.mubr.msk.f32.vlgmr.msra.gmra.mrb[8].mxu1 %vm406_vm2, %v226_v4 }
 0x39e   :  { %3397 = vmatpush3.msra.mxu1 %v218_v57  ;;  %3398 = vmatprep.mubr.msk.f32.mxu1 %vm276_vm1, %v922_v1 }
 0x39f   :  { %3642 = vmatprep.subr.bf16.mxu1 %v4025_v3 }
 0x3a1   :  { %3399 = vmatmul.mubr.msk.f32.vlgmr.msra.gmra.mrb[10].mxu1 %vm276_vm1, %v924_v2 }
 0x3a2   :  { %3401 = vmatprep.mubr.msk.f32.mxu1 %vm276_vm1, %v926_v5 }
 0x3a5   :  { %3402 = vmatmul.mubr.msk.f32.gmra.mrb[12].mxu1 %vm276_vm1, %v928_v34 }
 0x3a6   :  { %3404 = vmatprep.mubr.msk.f32.mxu1 %vm276_vm1, %v930_v29 }
 0x3a9   :  { %3405 = vmatmul.mubr.msk.f32.gmra.mrb[14].mxu1 %vm276_vm1, %v932_v62 }
 0x3aa   :  { %3407 = vmatprep.mubr.msk.f32.mxu1 %vm276_vm1, %v934_v56 }
 0x3ad   :  { %3408 = vmatmul.mubr.msk.f32.gmra.mrb[16].mxu1 %vm276_vm1, %v936_v6 }
 0x3ae   :  { %3426 = vmatprep.mubr.msk.f32.mxu1 %vm4026_vm3, %v4027_v9 }
 0x3c8   :  { %v3367_v7 = vpop.f32.mrb[12].mxu0 }
 0x3c9   :  { %v694_v8 = vpop.f32.mrb[13].mxu0  ;;  %v736_v12 = vsel %vm406_vm2, %v3367_v7, -inf }
 0x3ca   :  { %737 = vmax.xlane.f32.xlu1 %v736_v12  ;;  %v733_v14 = vsel %vm406_vm2, %v694_v8, -inf }
 0x3cb   :  { %734 = vmax.xlane.f32.xlu0 %v733_v14  ;;  %v4335_v14 = vstv %s5163_s3 }
 0x3d0   :  { %v3370_v15 = vpop.f32.mrb[14].mxu0 }
 0x3d1   :  { %v704_v17 = vpop.f32.mrb[15].mxu0  ;;  %v742_v21 = vsel %vm406_vm2, %v3370_v15, -inf }
 0x3d2   :  { %v739_v18 = vsel %vm406_vm2, %v704_v17, -inf }
 0x3d3   :  { %740 = vmax.xlane.f32.xlu0 %v739_v18 }
 0x3d7   :  { %743 = vmax.xlane.f32.xlu0 %v742_v21 }
 0x3d8   :  { %v3373_v23 = vpop.f32.mrb[16].mxu0 }
 0x3d9   :  { %v714_v24 = vpop.f32.mrb[17].mxu0  ;;  %v748_v25 = vsel %vm406_vm2, %v3373_v23, -inf }
 0x3da   :  { %v745_v31 = vsel %vm406_vm2, %v714_v24, -inf }
 0x3db   :  { %746 = vmax.xlane.f32.xlu1 %v745_v31  ;;  %749 = vmax.xlane.f32.xlu0 %v748_v25 }
 0x3dd   :  { %v3376_v32 = vpop.f32.mrb[18].mxu0 }
 0x3de   :  { %v724_v35 = vpop.f32.mrb[19].mxu0  ;;  %v754_v13 = vsel %vm406_vm2, %v3376_v32, -inf }
 0x3df   :  { %755 = vmax.xlane.f32.xlu0 %v754_v13  ;;  %v751_v20 = vsel %vm406_vm2, %v724_v35, -inf }
 0x3e0   :  { %752 = vmax.xlane.f32.xlu1 %v751_v20 }
 0x3f1   :  { %97 = vperm.xlu1 %3746, %v41_v36  }
 0x457   :  { %v738_v37 = vpop.xlane.xlu1 %737 }
 0x458   :  { %v758_v47 = vsub.f32 %v3367_v7, %v738_v37  ;;  %v735_v48 = vpop.xlane.xlu0 %734 }
 0x459   :  { %v757_v49 = vsub.f32 %v694_v8, %v735_v48 }
 0x45a   :  { %v767_v51 = vmul.f32 1.442695, %v758_v47 }
 0x45b   :  { %v765_v53 = vmul.f32 1.442695, %v757_v49 }
 0x45c   :  { %3785 = vpow2.f32 %v767_v51 }
 0x45d   :  { %3787 = vpow2.f32 %v765_v53 }
 0x460   :  { %v741_v54 = vpop.xlane.xlu0 %740 }
 0x461   :  { %v759_v58 = vsub.f32 %v704_v17, %v741_v54 }
 0x463   :  { %v769_v46 = vmul.f32 1.442695, %v759_v58 }
 0x464   :  { %v744_v59 = vpop.xlane.xlu0 %743 }
 0x465   :  { %3789 = vpow2.f32 %v769_v46  ;;  %v760_v60 = vsub.f32 %v3370_v15, %v744_v59 }
 0x466   :  { %v4324_v61 = vpop.eup %3785 }
 0x467   :  { %v4326_v1 = vpop.eup %3787  ;;  %v771_v50 = vmul.f32 1.442695, %v760_v60  ;;  %v784_v57 = vsel %vm406_vm2, %v4324_v61, 0.0 }
 0x468   :  { %v750_v2 = vpop.xlane.xlu0 %749  ;;  %785 = vadd.xlane.f32.xlu0 %v784_v57  ;;  %v747_v4 = vpop.xlane.xlu1 %746  ;;  %v781_v5 = vsel %vm406_vm2, %v4326_v1, 0.0 }
 0x469   :  { %3791 = vpow2.f32 %v771_v50  ;;  %v762_v34 = vsub.f32 %v3373_v23, %v750_v2  ;;  %v761_v29 = vsub.f32 %v714_v24, %v747_v4  ;;  %782 = vadd.xlane.f32.xlu1 %v781_v5 }
 0x46b   :  { %v775_v62 = vmul.f32 1.442695, %v762_v34  ;;  %v773_v56 = vmul.f32 1.442695, %v761_v29 }
 0x46c   :  { %v756_v6 = vpop.xlane.xlu0 %755 }
 0x46d   :  { %3793 = vpow2.f32 %v775_v62  ;;  %v764_v7 = vsub.f32 %v3376_v32, %v756_v6  ;;  %v753_v8 = vpop.xlane.xlu1 %752 }
 0x46e   :  { %3795 = vpow2.f32 %v773_v56  ;;  %v763_v12 = vsub.f32 %v724_v35, %v753_v8  ;;  %v39_v56 = vld [vmem:[%s5162_s2 + $0x38] sm:$0xff] }
 0x46f   :  { %v4337_v15 = vpop.eup %3789  ;;  %v779_v17 = vmul.f32 1.442695, %v764_v7 }
 0x470   :  { %v777_v18 = vmul.f32 1.442695, %v763_v12  ;;  %v588_v21 = vpop.f32.mrb[8].mxu1  ;;  %v787_v23 = vsel %vm406_vm2, %v4337_v15, 0.0 }
 0x471   :  { %3797 = vpow2.f32 %v779_v17  ;;  %v593_v24 = vmul.f32 %v4335_v14, %v588_v21  ;;  %788 = vadd.xlane.f32.xlu1 %v787_v23  ;;  %v3362_v25 = vpop.f32.mrb[9].mxu1 }
 0x472   :  { %3799 = vpow2.f32 %v777_v18 }
 0x473   :  { %v4342_v31 = vpop.eup %3791  ;;  %v594_v32 = vadd.f32 %v593_v24, %v4057_v0 }
 0x474   :  { %v4345_v35 = vpop.f32.mrb[10].mxu1  ;;  %v790_v13 = vsel %vm406_vm2, %v4342_v31, 0.0 }
 0x475   :  { %595 = vst.msk [vmem:[%s5164_s4] sm:$0xff] %vm406_vm2, %v594_v32  ;;  %v4353_v20 = vpop.f32.mrb[11].mxu1  ;;  %791 = vadd.xlane.f32.xlu0 %v790_v13  ;;  %v1061_v50 = vsel %vm406_vm2, %v4345_v35, -inf }
 0x476   :  { %v1058_v2 = vsel %vm406_vm2, %v4353_v20, -inf }
 0x477   :  { %v4355_v36 = vpop.eup %3793 }
 0x478   :  { %v4357_v37 = vpop.eup %3795  ;;  %v4359_v47 = vpop.f32.mrb[12].mxu1  ;;  %v796_v0 = vsel %vm406_vm2, %v4355_v36, 0.0 }
 0x479   :  { %v4363_v48 = vpop.f32.mrb[13].mxu1  ;;  %797 = vadd.xlane.f32.xlu0 %v796_v0  ;;  %v793_v49 = vsel %vm406_vm2, %v4357_v37, 0.0  ;;  %v1067_v4 = vsel %vm406_vm2, %v4359_v47, -inf }
 0x47a   :  { %794 = vadd.xlane.f32.xlu1 %v793_v49  ;;  %v1064_v5 = vsel %vm406_vm2, %v4363_v48, -inf }
 0x47b   :  { %v4367_v51 = vpop.eup %3797 }
 0x47c   :  { %v4369_v53 = vpop.eup %3799  ;;  %v4371_v54 = vpop.f32.mrb[14].mxu1  ;;  %v802_v58 = vsel %vm406_vm2, %v4367_v51, 0.0 }
 0x47d   :  { %v4375_v46 = vpop.f32.mrb[15].mxu1  ;;  %803 = vadd.xlane.f32.xlu0 %v802_v58  ;;  %v799_v59 = vsel %vm406_vm2, %v4369_v53, 0.0  ;;  %v1073_v34 = vsel %vm406_vm2, %v4371_v54, -inf }
 0x47e   :  { %800 = vadd.xlane.f32.xlu1 %v799_v59  ;;  %v1070_v29 = vsel %vm406_vm2, %v4375_v46, -inf }
 0x480   :  { %v4379_v60 = vpop.f32.mrb[16].mxu1 }
 0x481   :  { %v4383_v57 = vpop.f32.mrb[17].mxu1  ;;  %1062 = vmax.xlane.f32.xlu0 %v1061_v50  ;;  %v1079_v62 = vsel %vm406_vm2, %v4379_v60, -inf }
 0x482   :  { %1059 = vmax.xlane.f32.xlu1 %v1058_v2 }
 0x485   :  { %1068 = vmax.xlane.f32.xlu0 %v1067_v4 }
 0x486   :  { %1065 = vmax.xlane.f32.xlu1 %v1064_v5 }
 0x489   :  { %1074 = vmax.xlane.f32.xlu0 %v1073_v34 }
 0x48a   :  { %1071 = vmax.xlane.f32.xlu1 %v1070_v29 }
 0x48d   :  { %1080 = vmax.xlane.f32.xlu0 %v1079_v62 }
 0x49b   :  { %1246 = vrot.lane.b32.xlu1 %v4121_v38, %s4028_s6  ;;  %v1076_v38 = vsel %vm406_vm2, %v4383_v57, -inf }
 0x49f   :  { %1248 = vrot.lane.b32.xlu1 %v4125_v39, %s4028_s6  ;;  %v4418_v39 = vpop.permute.xlu1 %97 }
 0x4a3   :  { %87 = vperm.xlu0 %3745, %v39_v56  }
 0x4a7   :  { %1250 = vrot.lane.b32.xlu0 %v4129_v40, %s4028_s6 }
 0x4ab   :  { %1254 = vrot.lane.b32.xlu0 %v4137_v42, %s4028_s6 }
 0x4af   :  { %1258 = vrot.lane.b32.xlu0 %v4145_v44, %s4028_s6 }
 0x4c3   :  { %1077 = vmax.xlane.f32.xlu1 %v1076_v38 }
 0x4d4   :  { %1252 = vrot.lane.b32.xlu1 %v4133_v41, %s4028_s6 }
 0x4d8   :  { %1256 = vrot.lane.b32.xlu1 %v4141_v43, %s4028_s6 }
 0x4dc   :  { %1260 = vrot.lane.b32.xlu1 %v4149_v45, %s4028_s6 }
 0x4f5   :  { %v786_v40 = vpop.xlane.xlu0 %785 }
 0x4f6   :  { %3801 = vrcp.f32 %v786_v40  ;;  %v783_v42 = vpop.xlane.xlu1 %782 }
 0x4f7   :  { %3803 = vrcp.f32 %v783_v42 }
 0x4fe   :  { %v789_v44 = vpop.xlane.xlu1 %788 }
 0x4ff   :  { %3805 = vrcp.f32 %v789_v44 }
 0x500   :  { %v3802_v6 = vpop.eup %3801 }
 0x501   :  { %v3804_v7 = vpop.eup %3803  ;;  %v814_v8 = vmul.f32 %v3802_v6, %v4324_v61 }
 0x502   :  { %v813_v41 = vmul.f32 %v3804_v7, %v4326_v1  ;;  %v792_v12 = vpop.xlane.xlu0 %791 }
 0x503   :  { %3807 = vrcp.f32 %v792_v12 }
 0x504   :  { %v3627_v43 = vpack.c.bf16 %v814_v8, %v813_v41 }
 0x506   :  { %v798_v17 = vpop.xlane.xlu0 %797  ;;  %3629 = vmatpush3.bf16.xpose.msk.msra.mxu0 %vm4272_vm4, %v3627_v43 }
 0x507   :  { %3809 = vrcp.f32 %v798_v17  ;;  %v795_v45 = vpop.xlane.xlu1 %794  ;;  %3630 = vmatprep.subr.bf16.mxu0 %v4025_v3 }
 0x508   :  { %3811 = vrcp.f32 %v795_v45 }
 0x509   :  { %v3806_v21 = vpop.eup %3805 }
 0x50a   :  { %v804_v18 = vpop.xlane.xlu0 %803  ;;  %v815_v61 = vmul.f32 %v3806_v21, %v4337_v15 }
 0x50b   :  { %v801_v23 = vpop.xlane.xlu1 %800  ;;  %3813 = vrcp.f32 %v804_v18 }
 0x50c   :  { %3815 = vrcp.f32 %v801_v23 }
 0x50d   :  { %v3808_v24 = vpop.eup %3807 }
 0x50e   :  { %v816_v1 = vmul.f32 %v3808_v24, %v4342_v31  ;;  %v1063_v25 = vpop.xlane.xlu0 %1062  ;;  %v229_v24 = vadd.f32 %v4266_v11, %v4418_v39 }
 0x50f   :  { %v1083_v32 = vsub.f32 %v4345_v35, %v1063_v25  ;;  %v1060_v13 = vpop.xlane.xlu1 %1059 }
 0x510   :  { %v1082_v0 = vsub.f32 %v4353_v20, %v1060_v13  ;;  %v3631_v49 = vpack.c.bf16 %v816_v1, %v815_v61 }
 0x511   :  { %v3810_v58 = vpop.eup %3809  ;;  %v1092_v59 = vmul.f32 1.442695, %v1083_v32 }
 0x512   :  { %v3812_v50 = vpop.eup %3811  ;;  %v1090_v2 = vmul.f32 1.442695, %v1082_v0  ;;  %v1069_v4 = vpop.xlane.xlu0 %1068  ;;  %3633 = vmatpush3.bf16.xpose.msk.msra.mxu0 %vm4272_vm4, %v3631_v49  ;;  %v818_v35 = vmul.f32 %v3810_v58, %v4355_v36 }
 0x513   :  { %3817 = vpow2.f32 %v1092_v59  ;;  %v1085_v15 = vsub.f32 %v4359_v47, %v1069_v4  ;;  %v1066_v31 = vpop.xlane.xlu1 %1065  ;;  %3634 = vmatprep.subr.bf16.mxu0 %v4025_v3  ;;  %v817_v5 = vmul.f32 %v3812_v50, %v4357_v37 }
 0x514   :  { %3819 = vpow2.f32 %v1090_v2  ;;  %v1084_v20 = vsub.f32 %v4363_v48, %v1066_v31 }
 0x515   :  { %v1096_v34 = vmul.f32 1.442695, %v1085_v15  ;;  %v3814_v40 = vpop.eup %3813  ;;  %v3635_v42 = vpack.c.bf16 %v818_v35, %v817_v5  ;;  %v42_v5 = vld [vmem:[%s5162_s2 + $0x50] sm:$0xff] }
 0x516   :  { %v1094_v29 = vmul.f32 1.442695, %v1084_v20  ;;  %v1075_v62 = vpop.xlane.xlu0 %1074  ;;  %v3816_v44 = vpop.eup %3815  ;;  %v820_v48 = vmul.f32 %v3814_v40, %v4367_v51 }
 0x517   :  { %v1087_v56 = vsub.f32 %v4371_v54, %v1075_v62  ;;  %v1072_v38 = vpop.xlane.xlu1 %1071  ;;  %v819_v54 = vmul.f32 %v3816_v44, %v4369_v53 }
 0x518   :  { %3821 = vpow2.f32 %v1094_v29  ;;  %v1086_v47 = vsub.f32 %v4375_v46, %v1072_v38 }
 0x519   :  { %3823 = vpow2.f32 %v1096_v34  ;;  %v1100_v6 = vmul.f32 1.442695, %v1087_v56  ;;  %v3639_v43 = vpack.c.bf16 %v820_v48, %v819_v54 }
 0x51a   :  { %v1098_v36 = vmul.f32 1.442695, %v1086_v47  ;;  %v1081_v7 = vpop.xlane.xlu0 %1080  ;;  %3637 = vmatpush3.bf16.xpose.msk.msra.mxu0 %vm4272_vm4, %v3635_v42 }
 0x51b   :  { %v1089_v37 = vsub.f32 %v4379_v60, %v1081_v7  ;;  %3638 = vmatprep.subr.bf16.mxu0 %v4025_v3  ;;  %v1247_v23 = vpop.permute.xlu1 %1246 }
 0x51c   :  { %3825 = vpow2.f32 %v1098_v36 }
 0x51d   :  { %v4444_v8 = vpop.eup %3817  ;;  %3827 = vpow2.f32 %v1100_v6  ;;  %v1104_v41 = vmul.f32 1.442695, %v1089_v37 }
 0x51e   :  { %v4446_v46 = vpop.eup %3819  ;;  %v1109_v12 = vsel %vm406_vm2, %v4444_v8, 0.0 }
 0x51f   :  { %1110 = vadd.xlane.f32.xlu1 %v1109_v12  ;;  %v1106_v60 = vsel %vm406_vm2, %v4446_v46, 0.0  ;;  %3829 = vpow2.f32 %v1104_v41  ;;  %v1249_v32 = vpop.permute.xlu1 %1248 }
 0x520   :  { %1107 = vadd.xlane.f32.xlu0 %v1106_v60 }
 0x522   :  { %v4452_v17 = vpop.eup %3821  ;;  %v4454_v51 = vpop.permute.xlu0 %87  ;;  %3641 = vmatpush3.bf16.xpose.msk.msra.mxu0 %vm4272_vm4, %v3639_v43 }
 0x523   :  { %v221_v53 = vadd.f32 %v4116_v33, %v4454_v51  ;;  %v1112_v45 = vsel %vm406_vm2, %v4452_v17, 0.0  ;;  %v4462_v18 = vpop.eup %3823 }
 0x524   :  { %1113 = vadd.xlane.f32.xlu0 %v1112_v45  ;;  %v1115_v61 = vsel %vm406_vm2, %v4462_v18, 0.0  ;;  %v3072_v45 = vld [vmem:[%s5160_s0 + $0x20] sm:$0xff] }
 0x525   :  { %3429 = vmatprep.subr.mxu0 %v221_v53 }
 0x526   :  { %v4464_v21 = vpop.eup %3825  ;;  %v1251_v13 = vpop.permute.xlu0 %1250 }
 0x527   :  { %v1118_v1 = vsel %vm406_vm2, %v4464_v21, 0.0  ;;  %v4472_v33 = vpop.eup %3827 }
 0x528   :  { %1116 = vadd.xlane.f32.xlu0 %v1115_v61  ;;  %1119 = vadd.xlane.f32.xlu1 %v1118_v1  ;;  %v1121_v25 = vsel %vm406_vm2, %v4472_v33, 0.0 }
 0x529   :  { %3394 = vmatmul.mubr.msk.f32.vlgmr.msra.gmra.mrb[20].mxu0 %vm406_vm2, %v229_v24  ;;  %v4479_v11 = vpop.eup %3829 }
 0x52a   :  { %3430 = vmatpush3.msra.mxu0 %v221_v53  ;;  %3431 = vmatprep.mubr.msk.f32.mxu0 %vm276_vm1, %v1247_v23  ;;  %v1127_v0 = vsel %vm406_vm2, %v4479_v11, 0.0  ;;  %v1255_v59 = vpop.permute.xlu0 %1254 }
 0x52b   :  { %3658 = vmatprep.subr.bf16.mxu0 %v4025_v3 }
 0x52c   :  { %1122 = vadd.xlane.f32.xlu0 %v1121_v25 }
 0x52d   :  { %3432 = vmatmul.mubr.msk.f32.vlgmr.msra.gmra.mrb[22].mxu0 %vm276_vm1, %v1249_v32 }
 0x52e   :  { %3434 = vmatprep.mubr.msk.f32.mxu0 %vm276_vm1, %v1251_v13  ;;  %v1259_v15 = vpop.permute.xlu0 %1258  ;;  %v4009_v13 = vld [vmem:[%s5160_s0 + $0x8] sm:$0xff] }
 0x530   :  { %1128 = vadd.xlane.f32.xlu0 %v1127_v0 }
 0x550   :  { %v1078_v49 = vpop.xlane.xlu1 %1077 }
 0x551   :  { %v1088_v58 = vsub.f32 %v4383_v57, %v1078_v49 }
 0x553   :  { %v1102_v50 = vmul.f32 1.442695, %v1088_v58 }
 0x554   :  { %v1253_v2 = vpop.permute.xlu1 %1252 }
 0x555   :  { %3831 = vpow2.f32 %v1102_v50  ;;  %3435 = vmatmul.mubr.msk.f32.gmra.mrb[24].mxu0 %vm276_vm1, %v1253_v2 }
 0x556   :  { %3437 = vmatprep.mubr.msk.f32.mxu0 %vm276_vm1, %v1255_v59  ;;  %v3075_v59 = vld [vmem:[%s5160_s0 + $0x38] sm:$0xff] }
 0x558   :  { %v1257_v4 = vpop.permute.xlu1 %1256 }
 0x559   :  { %3438 = vmatmul.mubr.msk.f32.gmra.mrb[26].mxu0 %vm276_vm1, %v1257_v4 }
 0x55a   :  { %3440 = vmatprep.mubr.msk.f32.mxu0 %vm276_vm1, %v1259_v15 }
 0x55c   :  { %v1261_v31 = vpop.permute.xlu1 %1260 }
 0x55d   :  { %3441 = vmatmul.mubr.msk.f32.gmra.mrb[28].mxu0 %vm276_vm1, %v1261_v31 }
 0x55e   :  { %3459 = vmatprep.mubr.msk.f32.mxu0 %vm4026_vm3, %v4027_v9 }
 0x55f   :  { %v3832_v57 = vpop.eup %3831 }
 0x560   :  { %v1124_v35 = vsel %vm406_vm2, %v3832_v57, 0.0 }
 0x561   :  { %1125 = vadd.xlane.f32.xlu1 %v1124_v35  ;;  %v4012_v35 = vld [vmem:[%s5161_s1 + $0x10] sm:$0xff]  }
 0x572   :  { %102 = vperm.xlu1 %3746, %v42_v5   ;;  %v4013_v5 = vld [vmem:[%s5161_s1 + $0x18] sm:$0xff]  }
 0x5ac   :  { %v1111_v20 = vpop.xlane.xlu1 %1110 }
 0x5ad   :  { %3833 = vrcp.f32 %v1111_v20  ;;  %v1108_v34 = vpop.xlane.xlu0 %1107  ;;  %v4014_v20 = vld [vmem:[%s5161_s1 + $0x20] sm:$0xff]  }
 0x5ae   :  { %3835 = vrcp.f32 %v1108_v34  ;;  %v4015_v34 = vld [vmem:[%s5161_s1 + $0x28] sm:$0xff]  }
 0x5b1   :  { %v1114_v29 = vpop.xlane.xlu0 %1113 }
 0x5b2   :  { %3837 = vrcp.f32 %v1114_v29 }
 0x5b5   :  { %v1117_v62 = vpop.xlane.xlu0 %1116  ;;  %v1120_v42 = vpop.xlane.xlu1 %1119 }
 0x5b6   :  { %3839 = vrcp.f32 %v1117_v62 }
 0x5b7   :  { %v3834_v56 = vpop.eup %3833 }
 0x5b8   :  { %v3836_v38 = vpop.eup %3835  ;;  %v1139_v40 = vmul.f32 %v3834_v56, %v4444_v8 }
 0x5b9   :  { %v1138_v47 = vmul.f32 %v3836_v38, %v4446_v46  ;;  %v1123_v44 = vpop.xlane.xlu0 %1122 }
 0x5ba   :  { %3841 = vrcp.f32 %v1123_v44 }
 0x5bb   :  { %v3643_v6 = vpack.c.bf16 %v1139_v40, %v1138_v47  ;;  %3843 = vrcp.f32 %v1120_v42 }
 0x5bc   :  { %v3838_v36 = vpop.eup %3837 }
 0x5bd   :  { %3645 = vmatpush3.bf16.xpose.msk.msra.mxu1 %vm4272_vm4, %v3643_v6  ;;  %v1140_v37 = vmul.f32 %v3838_v36, %v4452_v17  ;;  %v1129_v43 = vpop.xlane.xlu0 %1128 }
 0x5be   :  { %3646 = vmatprep.subr.bf16.mxu1 %v4025_v3  ;;  %3845 = vrcp.f32 %v1129_v43 }
 0x5c0   :  { %v3840_v7 = vpop.eup %3839 }
 0x5c1   :  { %v1141_v48 = vmul.f32 %v3840_v7, %v4462_v18  ;;  %v3073_v18 = vld [vmem:[%s5160_s0 + $0x28] sm:$0xff] }
 0x5c2   :  { %v1576_v61 = vpack.c.bf16 %v3073_v18, %v3072_v45 }
 0x5c3   :  { %v3647_v54 = vpack.c.bf16 %v1141_v48, %v1140_v37 }
 0x5c4   :  { %v3842_v8 = vpop.eup %3841 }
 0x5c5   :  { %3649 = vmatpush3.bf16.xpose.msk.msra.mxu1 %vm4272_vm4, %v3647_v54  ;;  %v3844_v46 = vpop.eup %3843  ;;  %v1143_v41 = vmul.f32 %v3842_v8, %v4472_v33 }
 0x5c6   :  { %3650 = vmatprep.subr.bf16.mxu1 %v4025_v3  ;;  %v1142_v12 = vmul.f32 %v3844_v46, %v4464_v21 }
 0x5c8   :  { %v3651_v60 = vpack.c.bf16 %v1143_v41, %v1142_v12  ;;  %v3846_v53 = vpop.eup %3845 }
 0x5c9   :  { %v1145_v23 = vmul.f32 %v3846_v53, %v4479_v11  ;;  %v3074_v11 = vld [vmem:[%s5160_s0 + $0x30] sm:$0xff] }
 0x5ca   :  { %v1577_v15 = vpack.c.bf16 %v3075_v59, %v3074_v11 }
 0x5cd   :  { %3653 = vmatpush3.bf16.xpose.msk.msra.mxu1 %vm4272_vm4, %v3651_v60 }
 0x5ce   :  { %3654 = vmatprep.subr.bf16.mxu1 %v4025_v3 }
 0x5ee   :  { %v1126_v17 = vpop.xlane.xlu1 %1125 }
 0x5ef   :  { %3847 = vrcp.f32 %v1126_v17 }
 0x5f2   :  { %v4525_v49 = vpop.permute.xlu1 %102 }
 0x5f3   :  { %v234_v4 = vadd.f32 %v4215_v55, %v4525_v49  ;;  %v4011_v55 = vld [vmem:[%s5161_s1 + $0x8] sm:$0xff]  }
 0x5f9   :  { %v3848_v21 = vpop.eup %3847 }
 0x5fa   :  { %v1144_v24 = vmul.f32 %v3848_v21, %v3832_v57  ;;  %v4010_v57 = vld [vmem:[%s5161_s1] sm:$0xff]  }
 0x5fc   :  { %v914_v1 = vpop.f32.mrb[20].mxu0  ;;  %v3655_v33 = vpack.c.bf16 %v1145_v23, %v1144_v24 }
 0x5fd   :  { %v918_v25 = vmul.f32 %v914_v1, %v4335_v14  ;;  %v3395_v32 = vpop.f32.mrb[21].mxu0 }
 0x5fe   :  { %3657 = vmatpush3.bf16.xpose.msk.msra.mxu1 %vm4272_vm4, %v3655_v33 }
 0x5ff   :  { %v919_v0 = vadd.f32 %v4009_v13, %v918_v25  ;;  %3462 = vmatprep.subr.bf16.mxu1 %v1576_v61 }
 0x600   :  { %v3433_v58 = vpop.f32.mrb[22].mxu0 }
 0x601   :  { %920 = vst.msk [vmem:[%s5164_s4 + $0x8] sm:$0xff] %vm406_vm2, %v919_v0  ;;  %v1344_v50 = vpop.f32.mrb[23].mxu0  ;;  %v1386_v31 = vsel %vm406_vm2, %v3433_v58, -inf }
 0x602   :  { %v1383_v2 = vsel %vm406_vm2, %v1344_v50, -inf }
 0x603   :  { %1384 = vmax.xlane.f32.xlu0 %v1383_v2 }
 0x605   :  { %3427 = vmatmul.mubr.msk.f32.vlgmr.msra.gmra.mrb[18].mxu1 %vm406_vm2, %v234_v4 }
 0x606   :  { %3463 = vmatpush3.bf16.msra.mxu1 %v1576_v61  ;;  %3466 = vmatprep.mubr.msk.bf16.mxu1 %vm140_vm0, %v4010_v57 }
 0x607   :  { %1387 = vmax.xlane.f32.xlu0 %v1386_v31  ;;  %3464 = vmatprep.subr.bf16.mxu1 %v1577_v15 }
 0x60a   :  { %3465 = vmatpush3.bf16.msra.mxu1 %v1577_v15 }
 0x60d   :  { %3467 = vmatmul.mubr.msk.bf16.vlgmr.msra.gmra.mrb[20].mxu1 %vm140_vm0, %v4011_v55 }
 0x60e   :  { %3470 = vmatprep.mubr.msk.bf16.mxu1 %vm140_vm0, %v4012_v35 }
 0x615   :  { %3471 = vmatmul.mubr.msk.bf16.gmra.mrb[24].mxu1 %vm140_vm0, %v4013_v5 }
 0x616   :  { %3474 = vmatprep.mubr.msk.bf16.mxu1 %vm140_vm0, %v4014_v20 }
 0x61d   :  { %3475 = vmatmul.mubr.msk.bf16.gmra.mrb[28].mxu1 %vm140_vm0, %v4015_v34 }
 0x628   :  { %v3436_v29 = vpop.f32.mrb[24].mxu0 }
 0x629   :  { %v1354_v62 = vpop.f32.mrb[25].mxu0  ;;  %v1392_v47 = vsel %vm406_vm2, %v3436_v29, -inf }
 0x62a   :  { %v1389_v56 = vsel %vm406_vm2, %v1354_v62, -inf }
 0x62b   :  { %1390 = vmax.xlane.f32.xlu0 %v1389_v56 }
 0x62c   :  { %v3439_v38 = vpop.f32.mrb[26].mxu0 }
 0x62d   :  { %v1364_v40 = vpop.f32.mrb[27].mxu0  ;;  %v1398_v36 = vsel %vm406_vm2, %v3439_v38, -inf }
 0x62e   :  { %v1395_v42 = vsel %vm406_vm2, %v1364_v40, -inf }
 0x62f   :  { %1393 = vmax.xlane.f32.xlu0 %v1392_v47  ;;  %1396 = vmax.xlane.f32.xlu1 %v1395_v42  ;;  %v4016_v42 = vld [vmem:[%s5160_s0 + $0x10] sm:$0xff] }
 0x630   :  { %v3442_v44 = vpop.f32.mrb[28].mxu0 }
 0x631   :  { %v1374_v6 = vpop.f32.mrb[29].mxu0  ;;  %v1404_v37 = vsel %vm406_vm2, %v3442_v44, -inf }
 0x632   :  { %v1401_v7 = vsel %vm406_vm2, %v1374_v6, -inf }
 0x633   :  { %1399 = vmax.xlane.f32.xlu0 %v1398_v36 }
 0x637   :  { %1402 = vmax.xlane.f32.xlu0 %v1401_v7 }
 0x63b   :  { %1405 = vmax.xlane.f32.xlu0 %v1404_v37 }
 0x690   :  { %v1385_v48 = vpop.xlane.xlu0 %1384 }
 0x691   :  { %v1407_v54 = vsub.f32 %v1344_v50, %v1385_v48 }
 0x693   :  { %v1415_v41 = vmul.f32 1.442695, %v1407_v54 }
 0x694   :  { %v1388_v8 = vpop.xlane.xlu0 %1387 }
 0x695   :  { %v1408_v46 = vsub.f32 %v3433_v58, %v1388_v8 }
 0x697   :  { %v1417_v12 = vmul.f32 1.442695, %v1408_v46 }
 0x699   :  { %3849 = vpow2.f32 %v1417_v12 }
 0x69a   :  { %3851 = vpow2.f32 %v1415_v41 }
 0x6a3   :  { %v4572_v60 = vpop.eup %3849 }
 0x6a4   :  { %v1434_v43 = vsel %vm406_vm2, %v4572_v60, 0.0  ;;  %v4576_v17 = vpop.eup %3851 }
 0x6a5   :  { %1435 = vadd.xlane.f32.xlu0 %v1434_v43  ;;  %v1431_v53 = vsel %vm406_vm2, %v4576_v17, 0.0 }
 0x6a9   :  { %1432 = vadd.xlane.f32.xlu0 %v1431_v53  ;;  %v43_v53 = vld [vmem:[%s5162_s2 + $0x58] sm:$0xff] }
 0x6b8   :  { %v1391_v45 = vpop.xlane.xlu0 %1390 }
 0x6b9   :  { %v1409_v18 = vsub.f32 %v1354_v62, %v1391_v45 }
 0x6bb   :  { %v1419_v24 = vmul.f32 1.442695, %v1409_v18 }
 0x6bc   :  { %v1394_v21 = vpop.xlane.xlu0 %1393  ;;  %v1397_v1 = vpop.xlane.xlu1 %1396 }
 0x6bd   :  { %v1410_v23 = vsub.f32 %v3436_v29, %v1394_v21  ;;  %v1411_v32 = vsub.f32 %v1364_v40, %v1397_v1 }
 0x6bf   :  { %v1421_v61 = vmul.f32 1.442695, %v1410_v23  ;;  %v1423_v11 = vmul.f32 1.442695, %v1411_v32 }
 0x6c0   :  { %v1400_v33 = vpop.xlane.xlu0 %1399 }
 0x6c1   :  { %3853 = vpow2.f32 %v1421_v61  ;;  %v1412_v25 = vsub.f32 %v3439_v38, %v1400_v33 }
 0x6c2   :  { %3855 = vpow2.f32 %v1419_v24 }
 0x6c3   :  { %v1425_v13 = vmul.f32 1.442695, %v1412_v25 }
 0x6c4   :  { %v1403_v0 = vpop.xlane.xlu0 %1402 }
 0x6c5   :  { %v1413_v58 = vsub.f32 %v1374_v6, %v1403_v0  ;;  %3857 = vpow2.f32 %v1425_v13 }
 0x6c7   :  { %v1427_v59 = vmul.f32 1.442695, %v1413_v58 }
 0x6c8   :  { %v1406_v50 = vpop.xlane.xlu0 %1405 }
 0x6c9   :  { %3859 = vpow2.f32 %v1427_v59  ;;  %v1414_v2 = vsub.f32 %v3442_v44, %v1406_v50 }
 0x6ca   :  { %3861 = vpow2.f32 %v1423_v11 }
 0x6cb   :  { %v4580_v4 = vpop.eup %3853  ;;  %v1429_v15 = vmul.f32 1.442695, %v1414_v2 }
 0x6cc   :  { %v1440_v31 = vsel %vm406_vm2, %v4580_v4, 0.0  ;;  %v4584_v57 = vpop.eup %3855 }
 0x6cd   :  { %1441 = vadd.xlane.f32.xlu0 %v1440_v31  ;;  %3863 = vpow2.f32 %v1429_v15  ;;  %v1437_v55 = vsel %vm406_vm2, %v4584_v57, 0.0 }
 0x6cf   :  { %v4588_v35 = vpop.eup %3857 }
 0x6d0   :  { %v1446_v20 = vsel %vm406_vm2, %v4588_v35, 0.0 }
 0x6d1   :  { %1438 = vadd.xlane.f32.xlu0 %v1437_v55 }
 0x6d3   :  { %v4590_v5 = vpop.eup %3859 }
 0x6d4   :  { %v1449_v34 = vsel %vm406_vm2, %v4590_v5, 0.0  ;;  %v4596_v29 = vpop.eup %3861 }
 0x6d5   :  { %1447 = vadd.xlane.f32.xlu0 %v1446_v20  ;;  %1450 = vadd.xlane.f32.xlu1 %v1449_v34  ;;  %v1443_v56 = vsel %vm406_vm2, %v4596_v29, 0.0 }
 0x6d7   :  { %v4600_v38 = vpop.eup %3863 }
 0x6d8   :  { %v1239_v62 = vpop.f32.mrb[18].mxu1  ;;  %v1452_v6 = vsel %vm406_vm2, %v4600_v38, 0.0 }
 0x6d9   :  { %v1243_v40 = vmul.f32 %v1239_v62, %v4335_v14  ;;  %v3428_v47 = vpop.f32.mrb[19].mxu1  ;;  %1444 = vadd.xlane.f32.xlu0 %v1443_v56 }
 0x6db   :  { %v1244_v44 = vadd.f32 %v4016_v42, %v1243_v40 }
 0x6dd   :  { %1245 = vst.msk [vmem:[%s5164_s4 + $0x10] sm:$0xff] %vm406_vm2, %v1244_v44  ;;  %1453 = vadd.xlane.f32.xlu0 %v1452_v6 }
 0x6e0   :  { %v3468_v36 = vpop.f32.mrb[20].mxu1 }
 0x6e1   :  { %v1612_v7 = vpop.f32.mrb[21].mxu1  ;;  %v1621_v61 = vadd.f32 %v3468_v36, %v4102_v19 }
 0x6e2   :  { %v3469_v37 = vpop.f32.mrb[22].mxu1  ;;  %v1613_v23 = vadd.f32 %v1612_v7, %v4100_v16 }
 0x6e3   :  { %v1615_v48 = vpop.f32.mrb[23].mxu1  ;;  %v1661_v33 = vmul.f32 0.35355338, %v1621_v61  ;;  %v1624_v25 = vadd.f32 %v3469_v37, %v4109_v27 }
 0x6e4   :  { %v1616_v24 = vadd.f32 %v1615_v48, %v4105_v22 }
 0x6e5   :  { %v1662_v32 = vmul.f32 0.35355338, %v1624_v25 }
 0x6e6   :  { %v1660_v1 = vmul.f32 0.35355338, %v1616_v24 }
 0x6e8   :  { %v4612_v54 = vpop.f32.mrb[24].mxu1 }
 0x6e9   :  { %v4614_v8 = vpop.f32.mrb[25].mxu1 }
 0x6ea   :  { %v4616_v46 = vpop.f32.mrb[26].mxu1  ;;  %v1629_v7 = vadd.f32 %v4614_v8, %v4113_v30 }
 0x6eb   :  { %v1631_v41 = vpop.f32.mrb[27].mxu1 }
 0x6ec   :  { %v1632_v12 = vadd.f32 %v1631_v41, %v4209_v52  ;;  %v1659_v52 = vmul.f32 0.35355338, %v1613_v23 }
 0x6ee   :  { %3511 = vmatprep.subr.mxu1 %v1632_v12 }
 0x6ef   :  { %3512 = vmatpush3.msra.mxu1 %v1632_v12 }
 0x6f0   :  { %v4619_v43 = vpop.f32.mrb[28].mxu1  ;;  %3690 = vmatprep.subr.bf16.mxu1 %v4025_v3 }
 0x6f1   :  { %v4625_v45 = vpop.f32.mrb[29].mxu1 }
 0x6f2   :  { %v4627_v18 = vpop.f32.mrb[30].mxu1 }
 0x6f3   :  { %v4629_v21 = vpop.f32.mrb[31].mxu1  ;;  %107 = vperm.xlu0 %3745, %v43_v53  }
 0x708   :  { %1663 = vxpose.xlu1.b32.start [1/4] (short) (narrow) %v1659_v52, 64 }
 0x70c   :  { %1664 = vxpose.xlu1.b32.cont [2/4] (short) (narrow) %v1660_v1, 64 }
 0x710   :  { %1665 = vxpose.xlu1.b32.cont [3/4] (short) (narrow) %v1661_v33, 64 }
 0x714   :  { %1666 = vxpose.xlu1.b32.end [4/4] (short) (narrow) %v1662_v32, 64 }
 0x732   :  { %v1436_v13 = vpop.xlane.xlu0 %1435 }
 0x733   :  { %3865 = vrcp.f32 %v1436_v13 }
 0x736   :  { %v1433_v0 = vpop.xlane.xlu0 %1432 }
 0x737   :  { %3867 = vrcp.f32 %v1433_v0  ;;  %v4017_v0 = vld [vmem:[%s5160_s0 + $0x18] sm:$0xff] }
 0x73d   :  { %v3866_v58 = vpop.eup %3865 }
 0x73e   :  { %v1464_v11 = vmul.f32 %v3866_v58, %v4572_v60 }
 0x741   :  { %v3868_v16 = vpop.eup %3867 }
 0x742   :  { %v1463_v22 = vmul.f32 %v3868_v16, %v4576_v17 }
 0x744   :  { %v3659_v59 = vpack.c.bf16 %v1464_v11, %v1463_v22 }
 0x746   :  { %3661 = vmatpush3.bf16.xpose.msk.msra.mxu0 %vm4272_vm4, %v3659_v59 }
 0x747   :  { %3662 = vmatprep.subr.bf16.mxu0 %v4025_v3 }
 0x75a   :  { %v1442_v19 = vpop.xlane.xlu0 %1441 }
 0x75b   :  { %3869 = vrcp.f32 %v1442_v19 }
 0x75e   :  { %v1439_v27 = vpop.xlane.xlu0 %1438 }
 0x75f   :  { %3871 = vrcp.f32 %v1439_v27 }
 0x762   :  { %v1448_v50 = vpop.xlane.xlu0 %1447  ;;  %v1451_v55 = vpop.xlane.xlu1 %1450 }
 0x763   :  { %3873 = vrcp.f32 %v1448_v50 }
 0x765   :  { %v3870_v15 = vpop.eup %3869 }
 0x766   :  { %v1445_v2 = vpop.xlane.xlu0 %1444  ;;  %v1466_v60 = vmul.f32 %v3870_v15, %v4580_v4 }
 0x767   :  { %3875 = vrcp.f32 %v1445_v2 }
 0x769   :  { %v3872_v31 = vpop.eup %3871 }
 0x76a   :  { %v1465_v17 = vmul.f32 %v3872_v31, %v4584_v57  ;;  %v1454_v20 = vpop.xlane.xlu0 %1453 }
 0x76b   :  { %3877 = vrcp.f32 %v1454_v20 }
 0x76c   :  { %v3663_v34 = vpack.c.bf16 %v1466_v60, %v1465_v17  ;;  %3879 = vrcp.f32 %v1451_v55 }
 0x76d   :  { %v3874_v62 = vpop.eup %3873 }
 0x76e   :  { %3665 = vmatpush3.bf16.xpose.msk.msra.mxu0 %vm4272_vm4, %v3663_v34  ;;  %v1468_v40 = vmul.f32 %v3874_v62, %v4588_v35 }
 0x76f   :  { %3666 = vmatprep.subr.bf16.mxu0 %v4025_v3 }
 0x771   :  { %v3876_v56 = vpop.eup %3875 }
 0x772   :  { %v1467_v47 = vmul.f32 %v3876_v56, %v4596_v29  ;;  %v4656_v35 = vpop.permute.xlu0 %107 }
 0x773   :  { %v237_v29 = vadd.f32 %v4264_v10, %v4656_v35 }
 0x774   :  { %v3667_v42 = vpack.c.bf16 %v1468_v40, %v1467_v47 }
 0x775   :  { %v3878_v4 = vpop.eup %3877 }
 0x776   :  { %3669 = vmatpush3.bf16.xpose.msk.msra.mxu0 %vm4272_vm4, %v3667_v42  ;;  %v3880_v57 = vpop.eup %3879  ;;  %v1470_v44 = vmul.f32 %v3878_v4, %v4600_v38 }
 0x777   :  { %3670 = vmatprep.subr.bf16.mxu0 %v4025_v3  ;;  %v1469_v6 = vmul.f32 %v3880_v57, %v4590_v5 }
 0x779   :  { %v3671_v36 = vpack.c.bf16 %v1470_v44, %v1469_v6 }
 0x77e   :  { %3673 = vmatpush3.bf16.xpose.msk.msra.mxu0 %vm4272_vm4, %v3671_v36 }
 0x77f   :  { %3478 = vmatprep.subr.mxu0 %v1629_v7 }
 0x785   :  { %3460 = vmatmul.mubr.msk.f32.vlgmr.msra.gmra.mrb[30].mxu0 %vm406_vm2, %v237_v29 }
 0x786   :  { %3479 = vmatpush3.msra.mxu0 %v1629_v7 }
 0x787   :  { %3674 = vmatprep.subr.bf16.mxu0 %v4025_v3 }
 0x788   :  { %v4662_v38 = vpop.trf.xlu1 }
 0x789   :  { %2013 = vrot.lane.b32.xlu0 %v4662_v38, %s4023_s19  ;;  %3480 = vmatprep.mubr.msk.f32.mxu0 %vm276_vm1, %v4662_v38 }
 0x78c   :  { %v4668_v30 = vpop.trf.xlu1 }
 0x78d   :  { %3481 = vmatmul.mubr.msk.f32.vlgmr.msra.gmra.mrb[32].mxu0 %vm276_vm1, %v4668_v30  ;;  %2015 = vrot.lane.b32.xlu0 %v4668_v30, %s4023_s19 }
 0x790   :  { %v4674_v10 = vpop.trf.xlu1 }
 0x791   :  { %2017 = vrot.lane.b32.xlu0 %v4674_v10, %s4023_s19  ;;  %3483 = vmatprep.mubr.msk.f32.mxu0 %vm276_vm1, %v4674_v10 }
 0x794   :  { %v4680_v5 = vpop.trf.xlu1 }
 0x795   :  { %3484 = vmatmul.mubr.msk.f32.gmra.mrb[34].mxu0 %vm276_vm1, %v4680_v5  ;;  %2019 = vrot.lane.b32.xlu0 %v4680_v5, %s4023_s19 }
 0x798   :  { %v4686_v37 = vpop.trf.xlu1 }
 0x799   :  { %2021 = vrot.lane.b32.xlu0 %v4686_v37, %s4023_s19  ;;  %3486 = vmatprep.mubr.msk.f32.mxu0 %vm276_vm1, %v4686_v37 }
 0x79c   :  { %v4692_v48 = vpop.trf.xlu1 }
 0x79d   :  { %3487 = vmatmul.mubr.msk.f32.gmra.mrb[36].mxu0 %vm276_vm1, %v4692_v48  ;;  %2023 = vrot.lane.b32.xlu0 %v4692_v48, %s4023_s19 }
 0x7a0   :  { %v4698_v8 = vpop.trf.xlu1 }
 0x7a1   :  { %2025 = vrot.lane.b32.xlu0 %v4698_v8, %s4023_s19  ;;  %3489 = vmatprep.mubr.msk.f32.mxu0 %vm276_vm1, %v4698_v8 }
 0x7a4   :  { %v4704_v41 = vpop.trf.xlu1 }
 0x7a5   :  { %2027 = vrot.lane.b32.xlu0 %v4704_v41, %s4023_s19  ;;  %3490 = vmatmul.mubr.msk.f32.gmra.mrb[38].mxu0 %vm276_vm1, %v4704_v41 }
 0x7a6   :  { %3508 = vmatprep.mubr.msk.f32.mxu0 %vm4026_vm3, %v4027_v9 }
 0x7fb   :  { %v2014_v12 = vpop.permute.xlu0 %2013 }
 0x7fc   :  { %3513 = vmatprep.mubr.msk.f32.mxu1 %vm276_vm1, %v2014_v12 }
 0x7ff   :  { %v2016_v53 = vpop.permute.xlu0 %2015 }
 0x800   :  { %3514 = vmatmul.mubr.msk.f32.vlgmr.msra.gmra.mrb[32].mxu1 %vm276_vm1, %v2016_v53 }
 0x803   :  { %v2018_v23 = vpop.permute.xlu0 %2017 }
 0x804   :  { %3516 = vmatprep.mubr.msk.f32.mxu1 %vm276_vm1, %v2018_v23 }
 0x807   :  { %v2020_v52 = vpop.permute.xlu0 %2019 }
 0x808   :  { %3517 = vmatmul.mubr.msk.f32.gmra.mrb[34].mxu1 %vm276_vm1, %v2020_v52 }
 0x80b   :  { %v2022_v24 = vpop.permute.xlu0 %2021 }
 0x80c   :  { %3519 = vmatprep.mubr.msk.f32.mxu1 %vm276_vm1, %v2022_v24 }
 0x80f   :  { %v2024_v61 = vpop.permute.xlu0 %2023 }
 0x810   :  { %3520 = vmatmul.mubr.msk.f32.gmra.mrb[36].mxu1 %vm276_vm1, %v2024_v61 }
 0x813   :  { %v2026_v1 = vpop.permute.xlu0 %2025 }
 0x814   :  { %3522 = vmatprep.mubr.msk.f32.mxu1 %vm276_vm1, %v2026_v1 }
 0x817   :  { %v2028_v33 = vpop.permute.xlu0 %2027 }
 0x818   :  { %3523 = vmatmul.mubr.msk.f32.gmra.mrb[38].mxu1 %vm276_vm1, %v2028_v33 }
 0x819   :  { %3541 = vmatprep.mubr.msk.f32.mxu1 %vm4026_vm3, %v4027_v9 }
 0x858   :  { %v1564_v25 = vpop.f32.mrb[30].mxu0 }
 0x859   :  { %v1568_v32 = vmul.f32 %v1564_v25, %v4335_v14  ;;  %v3461_v13 = vpop.f32.mrb[31].mxu0 }
 0x85b   :  { %v1569_v58 = vadd.f32 %v4017_v0, %v1568_v32 }
 0x85d   :  { %1570 = vst.msk [vmem:[%s5164_s4 + $0x18] sm:$0xff] %vm406_vm2, %v1569_v58 }
 0x860   :  { %v3482_v16 = vpop.f32.mrb[32].mxu0 }
 0x861   :  { %v1785_v11 = vpop.f32.mrb[33].mxu0  ;;  %v1827_v22 = vsel %vm406_vm2, %v3482_v16, -inf }
 0x862   :  { %1828 = vmax.xlane.f32.xlu1 %v1827_v22  ;;  %v1824_v59 = vsel %vm406_vm2, %v1785_v11, -inf }
 0x863   :  { %1825 = vmax.xlane.f32.xlu0 %v1824_v59 }
 0x868   :  { %v4732_v19 = vpop.f32.mrb[34].mxu0 }
 0x869   :  { %v1833_v27 = vsel %vm406_vm2, %v4732_v19, -inf  ;;  %v1795_v50 = vpop.f32.mrb[35].mxu0 }
 0x86a   :  { %1834 = vmax.xlane.f32.xlu0 %v1833_v27  ;;  %v1830_v2 = vsel %vm406_vm2, %v1795_v50, -inf }
 0x86e   :  { %1831 = vmax.xlane.f32.xlu0 %v1830_v2 }
 0x870   :  { %v4737_v15 = vpop.f32.mrb[36].mxu0 }
 0x871   :  { %v1805_v31 = vpop.f32.mrb[37].mxu0  ;;  %v1839_v6 = vsel %vm406_vm2, %v4737_v15, -inf }
 0x872   :  { %v1836_v60 = vsel %vm406_vm2, %v1805_v31, -inf }
 0x873   :  { %1837 = vmax.xlane.f32.xlu0 %v1836_v60 }
 0x878   :  { %v4740_v17 = vpop.f32.mrb[38].mxu0 }
 0x879   :  { %v4742_v55 = vpop.f32.mrb[39].mxu0  ;;  %v1845_v23 = vsel %vm406_vm2, %v4740_v17, -inf }
 0x87a   :  { %v1842_v29 = vsel %vm406_vm2, %v4742_v55, -inf }
 0x8d3   :  { %v4744_v20 = vpop.f32.mrb[32].mxu1 }
 0x8d4   :  { %v2153_v34 = vsel %vm406_vm2, %v4744_v20, -inf  ;;  %v4748_v62 = vpop.f32.mrb[33].mxu1 }
 0x8d5   :  { %2154 = vmax.xlane.f32.xlu0 %v2153_v34  ;;  %v2150_v56 = vsel %vm406_vm2, %v4748_v62, -inf }
 0x8d9   :  { %2151 = vmax.xlane.f32.xlu0 %v2150_v56 }
 0x8db   :  { %v4752_v40 = vpop.f32.mrb[34].mxu1 }
 0x8dc   :  { %v2159_v47 = vsel %vm406_vm2, %v4752_v40, -inf  ;;  %v4756_v42 = vpop.f32.mrb[35].mxu1 }
 0x8dd   :  { %2160 = vmax.xlane.f32.xlu0 %v2159_v47  ;;  %v2156_v4 = vsel %vm406_vm2, %v4756_v42, -inf }
 0x8e1   :  { %2157 = vmax.xlane.f32.xlu0 %v2156_v4 }
 0x8e3   :  { %v4760_v57 = vpop.f32.mrb[36].mxu1 }
 0x8e4   :  { %v4762_v44 = vpop.f32.mrb[37].mxu1  ;;  %v2165_v7 = vsel %vm406_vm2, %v4760_v57, -inf }
 0x8e5   :  { %1840 = vmax.xlane.f32.xlu0 %v1839_v6  ;;  %v2162_v36 = vsel %vm406_vm2, %v4762_v44, -inf }
 0x8e6   :  { %2163 = vmax.xlane.f32.xlu1 %v2162_v36 }
 0x8e9   :  { %2166 = vmax.xlane.f32.xlu0 %v2165_v7 }
 0x8ea   :  { %1843 = vmax.xlane.f32.xlu1 %v1842_v29 }
 0x8eb   :  { %v4772_v12 = vpop.f32.mrb[38].mxu1 }
 0x8ec   :  { %v4774_v53 = vpop.f32.mrb[39].mxu1  ;;  %v2171_v24 = vsel %vm406_vm2, %v4772_v12, -inf }
 0x8ed   :  { %1846 = vmax.xlane.f32.xlu0 %v1845_v23  ;;  %v2168_v52 = vsel %vm406_vm2, %v4774_v53, -inf }
 0x8ee   :  { %2169 = vmax.xlane.f32.xlu1 %v2168_v52 }
 0x8ef   :  { %v1829_v61 = vpop.xlane.xlu1 %1828 }
 0x8f0   :  { %v1849_v1 = vsub.f32 %v3482_v16, %v1829_v61  ;;  %v1826_v33 = vpop.xlane.xlu0 %1825 }
 0x8f1   :  { %v1848_v25 = vsub.f32 %v1785_v11, %v1826_v33  ;;  %2172 = vmax.xlane.f32.xlu0 %v2171_v24 }
 0x8f2   :  { %v1858_v32 = vmul.f32 1.442695, %v1849_v1 }
 0x8f3   :  { %v1856_v13 = vmul.f32 1.442695, %v1848_v25 }
 0x8f4   :  { %3881 = vpow2.f32 %v1858_v32 }
 0x8f5   :  { %3883 = vpow2.f32 %v1856_v13 }
 0x8f7   :  { %v1835_v0 = vpop.xlane.xlu0 %1834 }
 0x8f8   :  { %v1851_v58 = vsub.f32 %v4732_v19, %v1835_v0 }
 0x8fa   :  { %v1862_v29 = vmul.f32 1.442695, %v1851_v58 }
 0x8fb   :  { %v1832_v22 = vpop.xlane.xlu0 %1831 }
 0x8fc   :  { %v1850_v59 = vsub.f32 %v1795_v50, %v1832_v22 }
 0x8fe   :  { %v4783_v27 = vpop.eup %3881  ;;  %v1860_v2 = vmul.f32 1.442695, %v1850_v59 }
 0x8ff   :  { %v4785_v60 = vpop.eup %3883  ;;  %v1875_v16 = vsel %vm406_vm2, %v4783_v27, 0.0 }
 0x900   :  { %3885 = vpow2.f32 %v1860_v2  ;;  %1876 = vadd.xlane.f32.xlu0 %v1875_v16  ;;  %v1838_v11 = vpop.xlane.xlu0 %1837  ;;  %v1872_v34 = vsel %vm406_vm2, %v4785_v60, 0.0 }
 0x901   :  { %v1852_v56 = vsub.f32 %v1805_v31, %v1838_v11  ;;  %1873 = vadd.xlane.f32.xlu1 %v1872_v34 }
 0x903   :  { %v1864_v47 = vmul.f32 1.442695, %v1852_v56 }
 0x905   :  { %3887 = vpow2.f32 %v1864_v47 }
 0x90a   :  { %v4791_v19 = vpop.eup %3885 }
 0x90b   :  { %v1878_v50 = vsel %vm406_vm2, %v4791_v19, 0.0 }
 0x90c   :  { %1879 = vadd.xlane.f32.xlu1 %v1878_v50 }
 0x90f   :  { %v4795_v4 = vpop.eup %3887 }
 0x910   :  { %v1884_v6 = vsel %vm406_vm2, %v4795_v4, 0.0 }
 0x911   :  { %1885 = vadd.xlane.f32.xlu1 %v1884_v6 }
 0x962   :  { %v2155_v36 = vpop.xlane.xlu0 %2154 }
 0x963   :  { %v2175_v7 = vsub.f32 %v4744_v20, %v2155_v36 }
 0x965   :  { %v2184_v31 = vmul.f32 1.442695, %v2175_v7 }
 0x966   :  { %v2152_v23 = vpop.xlane.xlu0 %2151 }
 0x967   :  { %3889 = vpow2.f32 %v2184_v31  ;;  %v2174_v52 = vsub.f32 %v4748_v62, %v2152_v23 }
 0x968   :  { %3891 = vpow2.f32 %v1862_v29 }
 0x969   :  { %v2182_v24 = vmul.f32 1.442695, %v2174_v52 }
 0x96a   :  { %v2161_v61 = vpop.xlane.xlu0 %2160 }
 0x96b   :  { %3893 = vpow2.f32 %v2182_v24  ;;  %v2177_v1 = vsub.f32 %v4752_v40, %v2161_v61 }
 0x96d   :  { %v2188_v33 = vmul.f32 1.442695, %v2177_v1 }
 0x96e   :  { %v2158_v25 = vpop.xlane.xlu0 %2157 }
 0x96f   :  { %3895 = vpow2.f32 %v2188_v33  ;;  %v2176_v40 = vsub.f32 %v4756_v42, %v2158_v25 }
 0x971   :  { %v4802_v32 = vpop.eup %3889  ;;  %v2186_v6 = vmul.f32 1.442695, %v2176_v40 }
 0x972   :  { %v1841_v13 = vpop.xlane.xlu0 %1840  ;;  %v2201_v20 = vsel %vm406_vm2, %v4802_v32, 0.0  ;;  %v4806_v0 = vpop.eup %3891 }
 0x973   :  { %v1853_v58 = vsub.f32 %v4737_v15, %v1841_v13  ;;  %v2164_v62 = vpop.xlane.xlu1 %2163  ;;  %2202 = vadd.xlane.f32.xlu0 %v2201_v20  ;;  %v1881_v16 = vsel %vm406_vm2, %v4806_v0, 0.0 }
 0x974   :  { %v2178_v42 = vsub.f32 %v4762_v44, %v2164_v62 }
 0x975   :  { %v4809_v22 = vpop.eup %3893  ;;  %v1866_v59 = vmul.f32 1.442695, %v1853_v58 }
 0x976   :  { %v2167_v2 = vpop.xlane.xlu0 %2166  ;;  %v2198_v11 = vsel %vm406_vm2, %v4809_v22, 0.0  ;;  %v2190_v23 = vmul.f32 1.442695, %v2178_v42 }
 0x977   :  { %3897 = vpow2.f32 %v1866_v59  ;;  %v2179_v34 = vsub.f32 %v4760_v57, %v2167_v2  ;;  %v1844_v56 = vpop.xlane.xlu1 %1843  ;;  %1882 = vadd.xlane.f32.xlu0 %v1881_v16  ;;  %2199 = vadd.xlane.f32.xlu1 %v2198_v11 }
 0x978   :  { %v1854_v15 = vsub.f32 %v4742_v55, %v1844_v56 }
 0x979   :  { %v4818_v47 = vpop.eup %3895  ;;  %v2192_v50 = vmul.f32 1.442695, %v2179_v34 }
 0x97a   :  { %v1868_v36 = vmul.f32 1.442695, %v1854_v15  ;;  %v1847_v7 = vpop.xlane.xlu0 %1846  ;;  %v2207_v29 = vsel %vm406_vm2, %v4818_v47, 0.0 }
 0x97b   :  { %3899 = vpow2.f32 %v2192_v50  ;;  %v1855_v31 = vsub.f32 %v4740_v17, %v1847_v7  ;;  %2208 = vadd.xlane.f32.xlu0 %v2207_v29  ;;  %v2170_v20 = vpop.xlane.xlu1 %2169 }
 0x97c   :  { %3901 = vpow2.f32 %v1868_v36 }
 0x97d   :  { %v1870_v57 = vmul.f32 1.442695, %v1855_v31  ;;  %3903 = vpow2.f32 %v2186_v6 }
 0x97e   :  { %v2173_v55 = vpop.xlane.xlu0 %2172 }
 0x97f   :  { %3905 = vpow2.f32 %v1870_v57  ;;  %v2181_v52 = vsub.f32 %v4772_v12, %v2173_v55 }
 0x980   :  { %3907 = vpow2.f32 %v2190_v23 }
 0x981   :  { %v4825_v24 = vpop.eup %3897  ;;  %v2196_v44 = vmul.f32 1.442695, %v2181_v52 }
 0x982   :  { %v1887_v61 = vsel %vm406_vm2, %v4825_v24, 0.0 }
 0x983   :  { %3909 = vpow2.f32 %v2196_v44  ;;  %1888 = vadd.xlane.f32.xlu0 %v1887_v61 }
 0x985   :  { %v4829_v1 = vpop.eup %3899 }
 0x986   :  { %v4831_v17 = vpop.eup %3901  ;;  %v2213_v33 = vsel %vm406_vm2, %v4829_v1, 0.0 }
 0x987   :  { %2214 = vadd.xlane.f32.xlu0 %v2213_v33  ;;  %v1890_v12 = vsel %vm406_vm2, %v4831_v17, 0.0  ;;  %v4837_v25 = vpop.eup %3903 }
 0x988   :  { %1891 = vadd.xlane.f32.xlu1 %v1890_v12  ;;  %v2204_v62 = vsel %vm406_vm2, %v4837_v25, 0.0 }
 0x989   :  { %v4839_v13 = vpop.eup %3905 }
 0x98a   :  { %v1893_v58 = vsel %vm406_vm2, %v4839_v13, 0.0  ;;  %v4845_v59 = vpop.eup %3907 }
 0x98b   :  { %1894 = vadd.xlane.f32.xlu0 %v1893_v58  ;;  %v2210_v34 = vsel %vm406_vm2, %v4845_v59, 0.0 }
 0x98c   :  { %2205 = vadd.xlane.f32.xlu1 %v2204_v62 }
 0x98d   :  { %v4847_v40 = vpop.eup %3909  ;;  %v1877_v2 = vpop.xlane.xlu0 %1876 }
 0x98e   :  { %3911 = vrcp.f32 %v1877_v2  ;;  %v1874_v16 = vpop.xlane.xlu1 %1873  ;;  %v2219_v11 = vsel %vm406_vm2, %v4847_v40, 0.0 }
 0x98f   :  { %3913 = vrcp.f32 %v1874_v16  ;;  %2220 = vadd.xlane.f32.xlu0 %v2219_v11 }
 0x990   :  { %2211 = vadd.xlane.f32.xlu1 %v2210_v34 }
 0x998   :  { %v3912_v56 = vpop.eup %3911 }
 0x999   :  { %v3914_v15 = vpop.eup %3913  ;;  %v1905_v50 = vmul.f32 %v3912_v56, %v4783_v27  ;;  %v2180_v27 = vsub.f32 %v4774_v53, %v2170_v20  ;;  %v1880_v53 = vpop.xlane.xlu1 %1879 }
 0x99a   :  { %v1904_v6 = vmul.f32 %v3914_v15, %v4785_v60 }
 0x99b   :  { %v2194_v60 = vmul.f32 1.442695, %v2180_v27 }
 0x99c   :  { %v3675_v42 = vpack.c.bf16 %v1905_v50, %v1904_v6 }
 0x99d   :  { %3915 = vpow2.f32 %v2194_v60 }
 0x99e   :  { %3677 = vmatpush3.bf16.xpose.msk.msra.mxu0 %vm4272_vm4, %v3675_v42  ;;  %v1637_v42 = vadd.f32 %v4612_v54, %v4293_v63 }
 0x99f   :  { %3678 = vmatprep.subr.bf16.mxu0 %v4025_v3 }
 0x9a1   :  { %2338 = vrot.lane.b32.xlu1 %v4662_v38, %s4024_s24 }
 0x9a5   :  { %2663 = vrot.lane.b32.xlu0 %v4662_v38, %s4028_s6 }
 0x9a7   :  { %v4875_v38 = vpop.eup %3915 }
 0x9a8   :  { %v2216_v36 = vsel %vm406_vm2, %v4875_v38, 0.0 }
 0x9a9   :  { %2342 = vrot.lane.b32.xlu0 %v4674_v10, %s4024_s24 }
 0x9ad   :  { %2344 = vrot.lane.b32.xlu0 %v4680_v5, %s4024_s24 }
 0x9b1   :  { %2346 = vrot.lane.b32.xlu0 %v4686_v37, %s4024_s24 }
 0x9b5   :  { %2348 = vrot.lane.b32.xlu0 %v4692_v48, %s4024_s24 }
 0x9b9   :  { %2350 = vrot.lane.b32.xlu0 %v4698_v8, %s4024_s24 }
 0x9bd   :  { %2352 = vrot.lane.b32.xlu0 %v4704_v41, %s4024_s24 }
 0x9c5   :  { %2217 = vadd.xlane.f32.xlu1 %v2216_v36 }
 0x9d6   :  { %2340 = vrot.lane.b32.xlu1 %v4668_v30, %s4024_s24 }
 0x9da   :  { %2665 = vrot.lane.b32.xlu1 %v4668_v30, %s4028_s6  ;;  %v1886_v30 = vpop.xlane.xlu1 %1885 }
 0x9de   :  { %2667 = vrot.lane.b32.xlu1 %v4674_v10, %s4028_s6 }
 0x9e2   :  { %2669 = vrot.lane.b32.xlu1 %v4680_v5, %s4028_s6 }
 0x9e6   :  { %2671 = vrot.lane.b32.xlu1 %v4686_v37, %s4028_s6 }
 0x9ea   :  { %2673 = vrot.lane.b32.xlu1 %v4692_v48, %s4028_s6 }
 0x9ee   :  { %2675 = vrot.lane.b32.xlu1 %v4698_v8, %s4028_s6 }
 0x9f2   :  { %2677 = vrot.lane.b32.xlu1 %v4704_v41, %s4028_s6 }
 0xa00   :  { %v2203_v7 = vpop.xlane.xlu0 %2202 }
 0xa01   :  { %3917 = vrcp.f32 %v2203_v7 }
 0xa02   :  { %3919 = vrcp.f32 %v1880_v53 }
 0xa04   :  { %v2200_v10 = vpop.xlane.xlu1 %2199  ;;  %v1883_v29 = vpop.xlane.xlu0 %1882 }
 0xa05   :  { %3921 = vrcp.f32 %v2200_v10 }
 0xa06   :  { %3923 = vrcp.f32 %v1883_v29 }
 0xa07   :  { %3925 = vrcp.f32 %v1886_v30 }
 0xa08   :  { %v2209_v5 = vpop.xlane.xlu0 %2208 }
 0xa0b   :  { %v3918_v37 = vpop.eup %3917 }
 0xa0c   :  { %v3920_v31 = vpop.eup %3919  ;;  %v2231_v8 = vmul.f32 %v3918_v37, %v4802_v32 }
 0xa0d   :  { %v1906_v55 = vmul.f32 %v3920_v31, %v4791_v19 }
 0xa0f   :  { %v3922_v57 = vpop.eup %3921 }
 0xa10   :  { %v3924_v48 = vpop.eup %3923  ;;  %v2230_v23 = vmul.f32 %v3922_v57, %v4809_v22  ;;  %v1889_v41 = vpop.xlane.xlu0 %1888 }
 0xa11   :  { %v1907_v52 = vmul.f32 %v3924_v48, %v4806_v0  ;;  %3927 = vrcp.f32 %v1889_v41  ;;  %v3926_v32 = vpop.eup %3925 }
 0xa12   :  { %v3691_v44 = vpack.c.bf16 %v2231_v8, %v2230_v23  ;;  %v1908_v20 = vmul.f32 %v3926_v32, %v4795_v4  ;;  %v1640_v23 = vadd.f32 %v4616_v46, %v4454_v51 }
 0xa13   :  { %v3679_v61 = vpack.c.bf16 %v1907_v52, %v1906_v55 }
 0xa14   :  { %3693 = vmatpush3.bf16.xpose.msk.msra.mxu1 %vm4272_vm4, %v3691_v44  ;;  %v2215_v33 = vpop.xlane.xlu0 %2214 }
 0xa15   :  { %3681 = vmatpush3.bf16.xpose.msk.msra.mxu0 %vm4272_vm4, %v3679_v61  ;;  %v1892_v12 = vpop.xlane.xlu1 %1891  ;;  %3694 = vmatprep.subr.bf16.mxu1 %v4025_v3  ;;  %v4018_v61 = vld [vmem:[%s5160_s0 + $0x20] sm:$0xff] }
 0xa16   :  { %3682 = vmatprep.subr.bf16.mxu0 %v4025_v3  ;;  %3929 = vrcp.f32 %v1892_v12 }
 0xa17   :  { %3931 = vrcp.f32 %v2209_v5 }
 0xa18   :  { %v1895_v19 = vpop.xlane.xlu0 %1894 }
 0xa19   :  { %3933 = vrcp.f32 %v1895_v19  ;;  %v2206_v0 = vpop.xlane.xlu1 %2205 }
 0xa1a   :  { %3935 = vrcp.f32 %v2206_v0 }
 0xa1b   :  { %v3928_v22 = vpop.eup %3927 }
 0xa1c   :  { %v1909_v58 = vmul.f32 %v3928_v22, %v4825_v24 }
 0xa1d   :  { %v2212_v62 = vpop.xlane.xlu1 %2211 }
 0xa1e   :  { %3937 = vrcp.f32 %v2212_v62  ;;  %v3683_v2 = vpack.c.bf16 %v1909_v58, %v1908_v20 }
 0xa1f   :  { %3939 = vrcp.f32 %v2215_v33 }
 0xa20   :  { %3685 = vmatpush3.bf16.xpose.msk.msra.mxu0 %vm4272_vm4, %v3683_v2  ;;  %v3930_v16 = vpop.eup %3929 }
 0xa21   :  { %3686 = vmatprep.subr.bf16.mxu0 %v4025_v3  ;;  %v3932_v11 = vpop.eup %3931  ;;  %v1910_v15 = vmul.f32 %v3930_v16, %v4831_v17  ;;  %v2339_v63 = vpop.permute.xlu1 %2338 }
 0xa22   :  { %v2233_v4 = vmul.f32 %v3932_v11, %v4818_v47 }
 0xa23   :  { %v3934_v34 = vpop.eup %3933 }
 0xa24   :  { %v3936_v56 = vpop.eup %3935  ;;  %v1911_v50 = vmul.f32 %v3934_v34, %v4839_v13 }
 0xa25   :  { %v2232_v24 = vmul.f32 %v3936_v56, %v4837_v25  ;;  %v1645_v25 = vadd.f32 %v4625_v45, %v4286_v26 }
 0xa26   :  { %v3687_v6 = vpack.c.bf16 %v1911_v50, %v1910_v15  ;;  %v4019_v15 = vld [vmem:[%s5160_s0 + $0x28] sm:$0xff] }
 0xa27   :  { %v3695_v27 = vpack.c.bf16 %v2233_v4, %v2232_v24 }
 0xa28   :  { %v3938_v60 = vpop.eup %3937  ;;  %3689 = vmatpush3.bf16.xpose.msk.msra.mxu0 %vm4272_vm4, %v3687_v6 }
 0xa29   :  { %3697 = vmatpush3.bf16.xpose.msk.msra.mxu1 %vm4272_vm4, %v3695_v27  ;;  %3544 = vmatprep.subr.mxu0 %v1637_v42  ;;  %v3940_v17 = vpop.eup %3939  ;;  %v2234_v47 = vmul.f32 %v3938_v60, %v4845_v59  ;;  %v2221_v59 = vpop.xlane.xlu0 %2220 }
 0xa2a   :  { %3698 = vmatprep.subr.bf16.mxu1 %v4025_v3  ;;  %v2235_v13 = vmul.f32 %v3940_v17, %v4829_v1  ;;  %3941 = vrcp.f32 %v2221_v59 }
 0xa2c   :  { %v3699_v54 = vpack.c.bf16 %v2235_v13, %v2234_v47 }
 0xa2d   :  { %v2664_v36 = vpop.permute.xlu0 %2663 }
 0xa2f   :  { %3509 = vmatmul.mubr.msk.f32.vlgmr.msra.gmra.mrb[40].mxu0 %vm406_vm2, %v1645_v25 }
 0xa30   :  { %3545 = vmatpush3.msra.mxu0 %v1637_v42  ;;  %3546 = vmatprep.mubr.msk.f32.mxu0 %vm276_vm1, %v2339_v63 }
 0xa31   :  { %3701 = vmatpush3.bf16.xpose.msk.msra.mxu1 %vm4272_vm4, %v3699_v54  ;;  %3706 = vmatprep.subr.bf16.mxu0 %v4025_v3  ;;  %v2343_v53 = vpop.permute.xlu0 %2342 }
 0xa32   :  { %3702 = vmatprep.subr.bf16.mxu1 %v4025_v3 }
 0xa34   :  { %v3942_v29 = vpop.eup %3941 }
 0xa35   :  { %v2345_v26 = vpop.permute.xlu0 %2344  ;;  %v2237_v31 = vmul.f32 %v3942_v29, %v4847_v40 }
 0xa39   :  { %v2347_v45 = vpop.permute.xlu0 %2346 }
 0xa3d   :  { %v2349_v30 = vpop.permute.xlu0 %2348 }
 0xa41   :  { %v2351_v5 = vpop.permute.xlu0 %2350 }
 0xa45   :  { %v2353_v41 = vpop.permute.xlu0 %2352 }
 0xa52   :  { %v2218_v1 = vpop.xlane.xlu1 %2217 }
 0xa53   :  { %3943 = vrcp.f32 %v2218_v1 }
 0xa56   :  { %v2341_v7 = vpop.permute.xlu1 %2340 }
 0xa57   :  { %3547 = vmatmul.mubr.msk.f32.vlgmr.msra.gmra.mrb[42].mxu0 %vm276_vm1, %v2341_v7 }
 0xa58   :  { %3549 = vmatprep.mubr.msk.f32.mxu0 %vm276_vm1, %v2343_v53 }
 0xa5a   :  { %v2666_v10 = vpop.permute.xlu1 %2665 }
 0xa5b   :  { %3550 = vmatmul.mubr.msk.f32.gmra.mrb[44].mxu0 %vm276_vm1, %v2345_v26 }
 0xa5c   :  { %3552 = vmatprep.mubr.msk.f32.mxu0 %vm276_vm1, %v2347_v45 }
 0xa5d   :  { %v3944_v37 = vpop.eup %3943 }
 0xa5e   :  { %v2236_v57 = vmul.f32 %v3944_v37, %v4875_v38  ;;  %v2668_v48 = vpop.permute.xlu1 %2667  ;;  %v1648_v38 = vadd.f32 %v4629_v21, %v4418_v39 }
 0xa5f   :  { %3553 = vmatmul.mubr.msk.f32.gmra.mrb[46].mxu0 %vm276_vm1, %v2349_v30 }
 0xa60   :  { %3555 = vmatprep.mubr.msk.f32.mxu0 %vm276_vm1, %v2351_v5  ;;  %v3703_v8 = vpack.c.bf16 %v2237_v31, %v2236_v57 }
 0xa62   :  { %v2670_v55 = vpop.permute.xlu1 %2669  ;;  %3705 = vmatpush3.bf16.xpose.msk.msra.mxu1 %vm4272_vm4, %v3703_v8 }
 0xa63   :  { %3556 = vmatmul.mubr.msk.f32.gmra.mrb[48].mxu0 %vm276_vm1, %v2353_v41  ;;  %3577 = vmatprep.subr.mxu1 %v1640_v23 }
 0xa64   :  { %3574 = vmatprep.mubr.msk.f32.mxu0 %vm4026_vm3, %v4027_v9 }
 0xa66   :  { %v2672_v40 = vpop.permute.xlu1 %2671 }
 0xa69   :  { %3542 = vmatmul.mubr.msk.f32.vlgmr.msra.gmra.mrb[40].mxu1 %vm406_vm2, %v1648_v38 }
 0xa6a   :  { %3578 = vmatpush3.msra.mxu1 %v1640_v23  ;;  %3579 = vmatprep.mubr.msk.f32.mxu1 %vm276_vm1, %v2664_v36  ;;  %v2674_v51 = vpop.permute.xlu1 %2673 }
 0xa6b   :  { %3722 = vmatprep.subr.bf16.mxu1 %v4025_v3 }
 0xa6d   :  { %3580 = vmatmul.mubr.msk.f32.vlgmr.msra.gmra.mrb[42].mxu1 %vm276_vm1, %v2666_v10 }
 0xa6e   :  { %3582 = vmatprep.mubr.msk.f32.mxu1 %vm276_vm1, %v2668_v48  ;;  %v2676_v46 = vpop.permute.xlu1 %2675 }
 0xa71   :  { %3583 = vmatmul.mubr.msk.f32.gmra.mrb[44].mxu1 %vm276_vm1, %v2670_v55 }
 0xa72   :  { %3585 = vmatprep.mubr.msk.f32.mxu1 %vm276_vm1, %v2672_v40  ;;  %v2678_v39 = vpop.permute.xlu1 %2677 }
 0xa75   :  { %3586 = vmatmul.mubr.msk.f32.gmra.mrb[46].mxu1 %vm276_vm1, %v2674_v51 }
 0xa76   :  { %3588 = vmatprep.mubr.msk.f32.mxu1 %vm276_vm1, %v2676_v46 }
 0xa79   :  { %3589 = vmatmul.mubr.msk.f32.gmra.mrb[48].mxu1 %vm276_vm1, %v2678_v39 }
 0xa7a   :  { %3607 = vmatprep.mubr.msk.f32.mxu1 %vm4026_vm3, %v4027_v9 }
 0xb02   :  { %v2005_v21 = vpop.f32.mrb[40].mxu0 }
 0xb03   :  { %v2009_v52 = vmul.f32 %v2005_v21, %v4335_v14  ;;  %v3510_v44 = vpop.f32.mrb[41].mxu0 }
 0xb05   :  { %v2010_v33 = vadd.f32 %v4018_v61, %v2009_v52 }
 0xb07   :  { %3099 = vst.msk [vmem:[%s5164_s4 + $0x20] sm:$0xff] %vm406_vm2, %v2010_v33 }
 0xb2a   :  { %v3548_v12 = vpop.f32.mrb[42].mxu0 }
 0xb2b   :  { %v2436_v19 = vpop.f32.mrb[43].mxu0  ;;  %v2478_v32 = vsel %vm406_vm2, %v3548_v12, -inf }
 0xb2c   :  { %2479 = vmax.xlane.f32.xlu1 %v2478_v32  ;;  %v2475_v9 = vsel %vm406_vm2, %v2436_v19, -inf }
 0xb2d   :  { %2476 = vmax.xlane.f32.xlu0 %v2475_v9 }
 0xb2e   :  { %v4970_v0 = vpop.f32.mrb[44].mxu0 }
 0xb2f   :  { %v4972_v22 = vpop.f32.mrb[45].mxu0  ;;  %v2484_v13 = vsel %vm406_vm2, %v4970_v0, -inf }
 0xb30   :  { %v2481_v20 = vsel %vm406_vm2, %v4972_v22, -inf }
 0xb31   :  { %2482 = vmax.xlane.f32.xlu1 %v2481_v20 }
 0xb32   :  { %v4976_v58 = vpop.f32.mrb[46].mxu0 }
 0xb33   :  { %v4978_v62 = vpop.f32.mrb[47].mxu0  ;;  %v2490_v26 = vsel %vm406_vm2, %v4976_v58, -inf }
 0xb34   :  { %v2487_v63 = vsel %vm406_vm2, %v4978_v62, -inf }
 0xb36   :  { %v4980_v2 = vpop.f32.mrb[48].mxu0 }
 0xb37   :  { %v4982_v16 = vpop.f32.mrb[49].mxu0  ;;  %v2496_v7 = vsel %vm406_vm2, %v4980_v2, -inf }
 0xb38   :  { %v2493_v45 = vsel %vm406_vm2, %v4982_v16, -inf }
 0xb3c   :  { %v2331_v11 = vpop.f32.mrb[40].mxu1 }
 0xb3d   :  { %v2335_v34 = vmul.f32 %v2331_v11, %v4335_v14  ;;  %v3543_v56 = vpop.f32.mrb[41].mxu1 }
 0xb3f   :  { %v2336_v50 = vadd.f32 %v4019_v15, %v2335_v34 }
 0xb40   :  { %v3581_v4 = vpop.f32.mrb[42].mxu1 }
 0xb41   :  { %3117 = vst.msk [vmem:[%s5164_s4 + $0x28] sm:$0xff] %vm406_vm2, %v2336_v50  ;;  %v2761_v24 = vpop.f32.mrb[43].mxu1  ;;  %v2803_v6 = vsel %vm406_vm2, %v3581_v4, -inf }
 0xb42   :  { %2804 = vmax.xlane.f32.xlu0 %v2803_v6  ;;  %v2800_v60 = vsel %vm406_vm2, %v2761_v24, -inf }
 0xb44   :  { %v4993_v42 = vpop.f32.mrb[44].mxu1 }
 0xb45   :  { %v2771_v27 = vpop.f32.mrb[45].mxu1  ;;  %v2809_v36 = vsel %vm406_vm2, %v4993_v42, -inf }
 0xb46   :  { %2801 = vmax.xlane.f32.xlu0 %v2800_v60  ;;  %v2806_v17 = vsel %vm406_vm2, %v2771_v27, -inf }
 0xb47   :  { %2807 = vmax.xlane.f32.xlu1 %v2806_v17 }
 0xb48   :  { %v4997_v47 = vpop.f32.mrb[46].mxu1 }
 0xb49   :  { %v4999_v25 = vpop.f32.mrb[47].mxu1  ;;  %v2815_v1 = vsel %vm406_vm2, %v4997_v47, -inf }
 0xb4a   :  { %2485 = vmax.xlane.f32.xlu0 %v2484_v13  ;;  %v2812_v53 = vsel %vm406_vm2, %v4999_v25, -inf }
 0xb4b   :  { %2488 = vmax.xlane.f32.xlu1 %v2487_v63 }
 0xb4c   :  { %v5005_v54 = vpop.f32.mrb[48].mxu1 }
 0xb4d   :  { %v5007_v59 = vpop.f32.mrb[49].mxu1  ;;  %v2821_v10 = vsel %vm406_vm2, %v5005_v54, -inf }
 0xb4e   :  { %2810 = vmax.xlane.f32.xlu0 %v2809_v36  ;;  %v2818_v30 = vsel %vm406_vm2, %v5007_v59, -inf }
 0xb4f   :  { %2813 = vmax.xlane.f32.xlu1 %v2812_v53 }
 0xb52   :  { %2491 = vmax.xlane.f32.xlu0 %v2490_v26 }
 0xb53   :  { %2494 = vmax.xlane.f32.xlu1 %v2493_v45 }
 0xb56   :  { %2816 = vmax.xlane.f32.xlu0 %v2815_v1 }
 0xb57   :  { %2819 = vmax.xlane.f32.xlu1 %v2818_v30 }
 0xb5a   :  { %2497 = vmax.xlane.f32.xlu0 %v2496_v7 }
 0xb5e   :  { %2822 = vmax.xlane.f32.xlu0 %v2821_v10 }
 0xbb9   :  { %v2480_v29 = vpop.xlane.xlu1 %2479 }
 0xbba   :  { %v2500_v5 = vsub.f32 %v3548_v12, %v2480_v29  ;;  %v2477_v37 = vpop.xlane.xlu0 %2476 }
 0xbbb   :  { %v2499_v31 = vsub.f32 %v2436_v19, %v2477_v37 }
 0xbbc   :  { %v2509_v57 = vmul.f32 1.442695, %v2500_v5 }
 0xbbd   :  { %v2507_v48 = vmul.f32 1.442695, %v2499_v31 }
 0xbbe   :  { %3945 = vpow2.f32 %v2509_v57  ;;  %v2483_v40 = vpop.xlane.xlu1 %2482 }
 0xbbf   :  { %3947 = vpow2.f32 %v2507_v48  ;;  %v2501_v46 = vsub.f32 %v4972_v22, %v2483_v40 }
 0xbc1   :  { %v2511_v61 = vmul.f32 1.442695, %v2501_v46 }
 0xbc8   :  { %v5025_v8 = vpop.eup %3945 }
 0xbc9   :  { %v5027_v23 = vpop.eup %3947  ;;  %v2526_v41 = vsel %vm406_vm2, %v5025_v8, 0.0 }
 0xbca   :  { %2527 = vadd.xlane.f32.xlu0 %v2526_v41  ;;  %v2523_v55 = vsel %vm406_vm2, %v5027_v23, 0.0 }
 0xbcb   :  { %2524 = vadd.xlane.f32.xlu1 %v2523_v55 }
 0xbcf   :  { %v2805_v38 = vpop.xlane.xlu0 %2804 }
 0xbd0   :  { %v2825_v51 = vsub.f32 %v3581_v4, %v2805_v38 }
 0xbd2   :  { %v2834_v39 = vmul.f32 1.442695, %v2825_v51 }
 0xbd3   :  { %v2802_v21 = vpop.xlane.xlu0 %2801 }
 0xbd4   :  { %3949 = vpow2.f32 %v2834_v39  ;;  %v2824_v52 = vsub.f32 %v2761_v24, %v2802_v21  ;;  %v2808_v44 = vpop.xlane.xlu1 %2807 }
 0xbd5   :  { %v2826_v12 = vsub.f32 %v2771_v27, %v2808_v44 }
 0xbd6   :  { %v2832_v33 = vmul.f32 1.442695, %v2824_v52 }
 0xbd7   :  { %v2486_v19 = vpop.xlane.xlu0 %2485  ;;  %v2836_v20 = vmul.f32 1.442695, %v2826_v12 }
 0xbd8   :  { %3951 = vpow2.f32 %v2832_v33  ;;  %v2502_v32 = vsub.f32 %v4970_v0, %v2486_v19  ;;  %v2489_v9 = vpop.xlane.xlu1 %2488 }
 0xbd9   :  { %3953 = vpow2.f32 %v2511_v61  ;;  %v2503_v34 = vsub.f32 %v4978_v62, %v2489_v9 }
 0xbda   :  { %v2513_v11 = vmul.f32 1.442695, %v2502_v32 }
 0xbdb   :  { %v2811_v56 = vpop.xlane.xlu0 %2810  ;;  %v2515_v4 = vmul.f32 1.442695, %v2503_v34 }
 0xbdc   :  { %3955 = vpow2.f32 %v2513_v11  ;;  %v2827_v22 = vsub.f32 %v4993_v42, %v2811_v56  ;;  %v2814_v15 = vpop.xlane.xlu1 %2813 }
 0xbdd   :  { %3957 = vpow2.f32 %v2836_v20  ;;  %v2828_v6 = vsub.f32 %v4999_v25, %v2814_v15 }
 0xbde   :  { %v5037_v50 = vpop.eup %3949  ;;  %v2838_v24 = vmul.f32 1.442695, %v2827_v22 }
 0xbdf   :  { %v2492_v27 = vpop.xlane.xlu0 %2491  ;;  %v2851_v0 = vsel %vm406_vm2, %v5037_v50, 0.0  ;;  %v2840_v42 = vmul.f32 1.442695, %v2828_v6 }
 0xbe0   :  { %3959 = vpow2.f32 %v2838_v24  ;;  %v2504_v60 = vsub.f32 %v4976_v58, %v2492_v27  ;;  %v2495_v62 = vpop.xlane.xlu1 %2494  ;;  %2852 = vadd.xlane.f32.xlu0 %v2851_v0 }
 0xbe1   :  { %3961 = vpow2.f32 %v2515_v4  ;;  %v2505_v63 = vsub.f32 %v4982_v16, %v2495_v62 }
 0xbe2   :  { %v5043_v17 = vpop.eup %3951  ;;  %v2517_v13 = vmul.f32 1.442695, %v2504_v60 }
 0xbe3   :  { %v2817_v36 = vpop.xlane.xlu0 %2816  ;;  %v2848_v25 = vsel %vm406_vm2, %v5043_v17, 0.0  ;;  %v5048_v53 = vpop.eup %3953  ;;  %v2519_v1 = vmul.f32 1.442695, %v2505_v63 }
 0xbe4   :  { %3963 = vpow2.f32 %v2517_v13  ;;  %v2829_v26 = vsub.f32 %v4997_v47, %v2817_v36  ;;  %v2820_v45 = vpop.xlane.xlu1 %2819  ;;  %2849 = vadd.xlane.f32.xlu1 %v2848_v25  ;;  %v2529_v16 = vsel %vm406_vm2, %v5048_v53, 0.0 }
 0xbe5   :  { %3965 = vpow2.f32 %v2840_v42  ;;  %v2830_v7 = vsub.f32 %v5007_v59, %v2820_v45 }
 0xbe6   :  { %v5051_v58 = vpop.eup %3955  ;;  %v2842_v30 = vmul.f32 1.442695, %v2829_v26 }
 0xbe7   :  { %v2498_v10 = vpop.xlane.xlu0 %2497  ;;  %v2532_v29 = vsel %vm406_vm2, %v5051_v58, 0.0  ;;  %v5058_v5 = vpop.eup %3957  ;;  %v2844_v31 = vmul.f32 1.442695, %v2830_v7 }
 0xbe8   :  { %3967 = vpow2.f32 %v2842_v30  ;;  %v2506_v47 = vsub.f32 %v4980_v2, %v2498_v10  ;;  %2530 = vadd.xlane.f32.xlu1 %v2529_v16  ;;  %2533 = vadd.xlane.f32.xlu0 %v2532_v29  ;;  %v2854_v48 = vsel %vm406_vm2, %v5058_v5, 0.0 }
 0xbe9   :  { %3969 = vpow2.f32 %v2519_v1 }
 0xbea   :  { %v5061_v37 = vpop.eup %3959  ;;  %v2521_v57 = vmul.f32 1.442695, %v2506_v47 }
 0xbeb   :  { %v2823_v59 = vpop.xlane.xlu0 %2822  ;;  %v2857_v41 = vsel %vm406_vm2, %v5061_v37, 0.0  ;;  %v5067_v55 = vpop.eup %3961 }
 0xbec   :  { %3971 = vpow2.f32 %v2521_v57  ;;  %v2831_v40 = vsub.f32 %v5005_v54, %v2823_v59  ;;  %2855 = vadd.xlane.f32.xlu1 %v2854_v48  ;;  %2858 = vadd.xlane.f32.xlu0 %v2857_v41  ;;  %v2535_v51 = vsel %vm406_vm2, %v5067_v55, 0.0 }
 0xbed   :  { %3973 = vpow2.f32 %v2844_v31 }
 0xbee   :  { %v5070_v2 = vpop.eup %3963  ;;  %v2846_v38 = vmul.f32 1.442695, %v2831_v40 }
 0xbef   :  { %v2538_v46 = vsel %vm406_vm2, %v5070_v2, 0.0  ;;  %v5076_v39 = vpop.eup %3965 }
 0xbf0   :  { %3975 = vpow2.f32 %v2846_v38  ;;  %2536 = vadd.xlane.f32.xlu1 %v2535_v51  ;;  %2539 = vadd.xlane.f32.xlu0 %v2538_v46  ;;  %v2860_v54 = vsel %vm406_vm2, %v5076_v39, 0.0 }
 0xbf2   :  { %v5078_v21 = vpop.eup %3967 }
 0xbf3   :  { %v2863_v52 = vsel %vm406_vm2, %v5078_v21, 0.0  ;;  %v5084_v44 = vpop.eup %3969 }
 0xbf4   :  { %2861 = vadd.xlane.f32.xlu1 %v2860_v54  ;;  %2864 = vadd.xlane.f32.xlu0 %v2863_v52  ;;  %v2541_v33 = vsel %vm406_vm2, %v5084_v44, 0.0 }
 0xbf6   :  { %v5086_v61 = vpop.eup %3971 }
 0xbf7   :  { %v2544_v12 = vsel %vm406_vm2, %v5086_v61, 0.0  ;;  %v5092_v19 = vpop.eup %3973 }
 0xbf8   :  { %2542 = vadd.xlane.f32.xlu1 %v2541_v33  ;;  %2545 = vadd.xlane.f32.xlu0 %v2544_v12  ;;  %v2866_v9 = vsel %vm406_vm2, %v5092_v19, 0.0 }
 0xbfa   :  { %v5094_v32 = vpop.eup %3975 }
 0xbfb   :  { %v2869_v20 = vsel %vm406_vm2, %v5094_v32, 0.0 }
 0xbfc   :  { %2867 = vadd.xlane.f32.xlu1 %v2866_v9  ;;  %2870 = vadd.xlane.f32.xlu0 %v2869_v20 }
 0xc57   :  { %v2528_v11 = vpop.xlane.xlu0 %2527 }
 0xc58   :  { %3977 = vrcp.f32 %v2528_v11  ;;  %v2525_v34 = vpop.xlane.xlu1 %2524 }
 0xc59   :  { %3979 = vrcp.f32 %v2525_v34 }
 0xc62   :  { %v3978_v56 = vpop.eup %3977 }
 0xc63   :  { %v3980_v22 = vpop.eup %3979  ;;  %v2556_v15 = vmul.f32 %v3978_v56, %v5025_v8 }
 0xc64   :  { %v2555_v4 = vmul.f32 %v3980_v22, %v5027_v23  ;;  %v4020_v22 = vld [vmem:[%s5160_s0 + $0x30] sm:$0xff] }
 0xc66   :  { %v3707_v24 = vpack.c.bf16 %v2556_v15, %v2555_v4 }
 0xc68   :  { %3709 = vmatpush3.bf16.xpose.msk.msra.mxu0 %vm4272_vm4, %v3707_v24 }
 0xc69   :  { %3710 = vmatprep.subr.bf16.mxu0 %v4025_v3 }
 0xc6d   :  { %v2853_v6 = vpop.xlane.xlu0 %2852 }
 0xc6e   :  { %3981 = vrcp.f32 %v2853_v6 }
 0xc71   :  { %v2850_v27 = vpop.xlane.xlu1 %2849 }
 0xc72   :  { %3983 = vrcp.f32 %v2850_v27 }
 0xc75   :  { %v2531_v0 = vpop.xlane.xlu1 %2530  ;;  %v2534_v60 = vpop.xlane.xlu0 %2533 }
 0xc76   :  { %3985 = vrcp.f32 %v2531_v0 }
 0xc77   :  { %3987 = vrcp.f32 %v2534_v60 }
 0xc78   :  { %v3982_v13 = vpop.eup %3981 }
 0xc79   :  { %v2856_v62 = vpop.xlane.xlu1 %2855  ;;  %v2859_v42 = vpop.xlane.xlu0 %2858  ;;  %v2881_v23 = vmul.f32 %v3982_v13, %v5037_v50 }
 0xc7a   :  { %3989 = vrcp.f32 %v2856_v62 }
 0xc7b   :  { %3991 = vrcp.f32 %v2859_v42 }
 0xc7c   :  { %v3984_v8 = vpop.eup %3983 }
 0xc7d   :  { %v2880_v63 = vmul.f32 %v3984_v8, %v5043_v17  ;;  %v2537_v36 = vpop.xlane.xlu1 %2536  ;;  %v2540_v25 = vpop.xlane.xlu0 %2539 }
 0xc7e   :  { %3993 = vrcp.f32 %v2537_v36 }
 0xc7f   :  { %3995 = vrcp.f32 %v2540_v25  ;;  %v3723_v26 = vpack.c.bf16 %v2881_v23, %v2880_v63 }
 0xc80   :  { %v3986_v45 = vpop.eup %3985 }
 0xc81   :  { %v3988_v1 = vpop.eup %3987  ;;  %v2557_v30 = vmul.f32 %v3986_v45, %v5048_v53  ;;  %v2862_v7 = vpop.xlane.xlu1 %2861  ;;  %3725 = vmatpush3.bf16.xpose.msk.msra.mxu1 %vm4272_vm4, %v3723_v26 }
 0xc82   :  { %v2865_v10 = vpop.xlane.xlu0 %2864  ;;  %v2558_v16 = vmul.f32 %v3988_v1, %v5051_v58  ;;  %3997 = vrcp.f32 %v2862_v7  ;;  %3726 = vmatprep.subr.bf16.mxu1 %v4025_v3 }
 0xc83   :  { %3999 = vrcp.f32 %v2865_v10 }
 0xc84   :  { %v3990_v50 = vpop.eup %3989  ;;  %v3711_v17 = vpack.c.bf16 %v2558_v16, %v2557_v30 }
 0xc85   :  { %v3992_v29 = vpop.eup %3991  ;;  %v2882_v47 = vmul.f32 %v3990_v50, %v5058_v5  ;;  %v2543_v31 = vpop.xlane.xlu1 %2542 }
 0xc86   :  { %v2546_v57 = vpop.xlane.xlu0 %2545  ;;  %v2883_v53 = vmul.f32 %v3992_v29, %v5061_v37  ;;  %4001 = vrcp.f32 %v2543_v31  ;;  %3713 = vmatpush3.bf16.xpose.msk.msra.mxu0 %vm4272_vm4, %v3711_v17 }
 0xc87   :  { %4003 = vrcp.f32 %v2546_v57  ;;  %3714 = vmatprep.subr.bf16.mxu0 %v4025_v3 }
 0xc88   :  { %v3994_v58 = vpop.eup %3993  ;;  %v3727_v59 = vpack.c.bf16 %v2883_v53, %v2882_v47 }
 0xc89   :  { %v3996_v48 = vpop.eup %3995  ;;  %v2559_v41 = vmul.f32 %v3994_v58, %v5067_v55  ;;  %v2868_v40 = vpop.xlane.xlu1 %2867 }
 0xc8a   :  { %v2871_v38 = vpop.xlane.xlu0 %2870  ;;  %v2560_v5 = vmul.f32 %v3996_v48, %v5070_v2  ;;  %4005 = vrcp.f32 %v2868_v40  ;;  %3729 = vmatpush3.bf16.xpose.msk.msra.mxu1 %vm4272_vm4, %v3727_v59 }
 0xc8b   :  { %4007 = vrcp.f32 %v2871_v38  ;;  %3730 = vmatprep.subr.bf16.mxu1 %v4025_v3 }
 0xc8c   :  { %v3998_v37 = vpop.eup %3997  ;;  %v3715_v51 = vpack.c.bf16 %v2560_v5, %v2559_v41 }
 0xc8d   :  { %v4000_v46 = vpop.eup %3999  ;;  %v2884_v54 = vmul.f32 %v3998_v37, %v5076_v39 }
 0xc8e   :  { %v2885_v52 = vmul.f32 %v4000_v46, %v5078_v21  ;;  %3717 = vmatpush3.bf16.xpose.msk.msra.mxu0 %vm4272_vm4, %v3715_v51 }
 0xc8f   :  { %3718 = vmatprep.subr.bf16.mxu0 %v4025_v3 }
 0xc90   :  { %v4002_v55 = vpop.eup %4001  ;;  %v3731_v2 = vpack.c.bf16 %v2885_v52, %v2884_v54 }
 0xc91   :  { %v4004_v33 = vpop.eup %4003  ;;  %v2561_v12 = vmul.f32 %v4002_v55, %v5084_v44  ;;  %v1653_v44 = vadd.f32 %v4619_v43, %v4525_v49 }
 0xc92   :  { %v2562_v9 = vmul.f32 %v4004_v33, %v5086_v61  ;;  %3733 = vmatpush3.bf16.xpose.msk.msra.mxu1 %vm4272_vm4, %v3731_v2 }
 0xc93   :  { %3734 = vmatprep.subr.bf16.mxu1 %v4025_v3  ;;  %v1656_v3 = vadd.f32 %v4627_v18, %v4656_v35  ;;  %v4021_v18 = vld [vmem:[%s5160_s0 + $0x38] sm:$0xff] }
 0xc94   :  { %v4006_v39 = vpop.eup %4005  ;;  %v3719_v20 = vpack.c.bf16 %v2562_v9, %v2561_v12 }
 0xc95   :  { %v4008_v21 = vpop.eup %4007  ;;  %v2886_v11 = vmul.f32 %v4006_v39, %v5092_v19 }
 0xc96   :  { %v2887_v34 = vmul.f32 %v4008_v21, %v5094_v32  ;;  %3721 = vmatpush3.bf16.xpose.msk.msra.mxu0 %vm4272_vm4, %v3719_v20 }
 0xc98   :  { %v3735_v56 = vpack.c.bf16 %v2887_v34, %v2886_v11 }
 0xc9a   :  { %3737 = vmatpush3.bf16.xpose.msk.msra.mxu1 %vm4272_vm4, %v3735_v56 }
 0xc9d   :  { %3575 = vmatmul.mubr.msk.f32.vlgmr.msra.gmra.mrb[50].mxu0 %vm406_vm2, %v1653_v44 }
 0xca1   :  { %3608 = vmatmul.mubr.msk.f32.vlgmr.msra.gmra.mrb[50].mxu1 %vm406_vm2, %v1656_v3 }
 0xd70   :  { %v2656_v61 = vpop.f32.mrb[50].mxu0 }
 0xd71   :  { %v2660_v19 = vmul.f32 %v2656_v61, %v4335_v14  ;;  %v3576_v32 = vpop.f32.mrb[51].mxu0 }
 0xd73   :  { %v2661_v28 = vadd.f32 %v4020_v22, %v2660_v19 }
 0xd74   :  { %v2981_v15 = vpop.f32.mrb[50].mxu1 }
 0xd75   :  { %3135 = vst.msk [vmem:[%s5164_s4 + $0x30] sm:$0xff] %vm406_vm2, %v2661_v28  ;;  %v2985_v49 = vmul.f32 %v2981_v15, %v4335_v14  ;;  %v3609_v43 = vpop.f32.mrb[51].mxu1 }
 0xd77   :  { %v2986_v35 = vadd.f32 %v4021_v18, %v2985_v49 }
 0xd79   :  { %3153 = vst.msk [vmem:[%s5164_s4 + $0x38] sm:$0xff] %vm406_vm2, %v2986_v35 }

</bundles_post_ra>
